<compile_context>
chip_gen: v7x
topology: tpu7x:2x2x1
jax: 0.10.0
libtpu: 0.0.40
codegen_flags: <defaults>
</compile_context>

<pallas_src>
import itertools
import math

import jax
import jax.numpy as jnp
from jax.experimental import pallas as pl
from jax.experimental.pallas import tpu as pltpu

INV_SQRT2 = 0.7071067811865476
NUM_HEADS = 4
EMBED = 256
BN_EPS = 1e-5
LN_EPS = 1e-5
DILATIONS = (1, 2, 4)


def _erf(x):
    # Abramowitz & Stegun 7.1.26 rational approximation, |error| <= 1.5e-7.
    a1, a2, a3, a4, a5 = (0.254829592, -0.284496736, 1.421413741,
                          -1.453152027, 1.061405429)
    pconst = 0.3275911
    sgn = jnp.where(x < 0.0, -1.0, 1.0)
    ax = jnp.abs(x)
    t = 1.0 / (1.0 + pconst * ax)
    poly = ((((a5 * t + a4) * t + a3) * t + a2) * t + a1) * t
    return sgn * (1.0 - poly * jnp.exp(-ax * ax))


def _gelu(x):
    # exact GELU (erf form), same as torch.nn.GELU() defaults
    return 0.5 * x * (1.0 + _erf(x * INV_SQRT2))


# ---------------------------------------------------------------------------
# Fused kernel: TCN (3x conv+BN+GELU) -> MHA(last query) -> fc head
# ---------------------------------------------------------------------------
def multi_temporal_kernel(x_ref,
                          w1_ref, b1_ref, sc1_ref, sh1_ref,
                          w2_ref, b2_ref, sc2_ref, sh2_ref,
                          w3_ref, b3_ref, sc3_ref, sh3_ref,
                          shifts_ref, hmask_ref,
                          wqkv_ref, bqkv_ref, wo_ref, bo_ref,
                          wf1_ref, bf1_ref, lng_ref, lnb_ref, wf2_ref, bf2_ref,
                          out_ref):
    B, L, C_in = x_ref.shape
    BL = B * L
    H, E = hmask_ref.shape
    Dh = E // H

    def conv_bn_gelu(h2d, w_ref, b_ref, scale_ref, shift_ref, layer):
        # dilated k=3 'same' Conv1d + folded eval-mode BatchNorm + exact GELU.
        # h2d: (B*L, Cin) f32, w_ref: (3, Cin, Cout) bf16, shift matrices: (B*L, B*L) f32.
        hb = h2d.astype(jnp.bfloat16)
        t_left = jnp.dot(hb, w_ref[0], preferred_element_type=jnp.float32)
        t_mid = jnp.dot(hb, w_ref[1], preferred_element_type=jnp.float32)
        t_right = jnp.dot(hb, w_ref[2], preferred_element_type=jnp.float32)
        sp = shifts_ref[layer, 0]          # moves tap-0 contribution forward by dil
        sm = shifts_ref[layer, 1]          # moves tap-2 contribution backward by dil
        acc = (t_mid
               + jnp.dot(sp, t_left, preferred_element_type=jnp.float32)
               + jnp.dot(sm, t_right, preferred_element_type=jnp.float32))
        y = (acc + b_ref[...]) * scale_ref[...] + shift_ref[...]
        return _gelu(y)

    # ---------------- TCN ----------------
    h = x_ref[...].reshape(BL, C_in)
    h = conv_bn_gelu(h, w1_ref, b1_ref, sc1_ref, sh1_ref, 0)
    h = conv_bn_gelu(h, w2_ref, b2_ref, sc2_ref, sh2_ref, 1)
    h = conv_bn_gelu(h, w3_ref, b3_ref, sc3_ref, sh3_ref, 2)     # (B*L, E) f32

    # ---------------- MHA (4 heads), only the last query position is consumed ----------------
    qkv = (jnp.dot(h.astype(jnp.bfloat16), wqkv_ref[...],
                   preferred_element_type=jnp.float32) + bqkv_ref[...])     # (B*L, 3E)
    qkv3 = qkv.reshape(B, L, 3 * E)
    q_last = qkv3[:, L - 1:L, 0:E] * (1.0 / math.sqrt(Dh))                  # (B, 1, E)
    k = qkv3[:, :, E:2 * E]                                                 # (B, L, E)
    v = qkv3[:, :, 2 * E:3 * E]                                             # (B, L, E)

    hm = hmask_ref[...]                                                     # (H, E) 0/1 mask
    prod = (k * q_last).reshape(BL, E)
    scores = jax.lax.dot_general(prod, hm, (((1,), (1,)), ((), ())),
                                 preferred_element_type=jnp.float32)        # (B*L, H)
    scores = scores.reshape(B, L, H)
    m = jnp.max(scores, axis=1, keepdims=True)
    e = jnp.exp(scores - m)
    probs = e / jnp.sum(e, axis=1, keepdims=True)                           # softmax over L
    p_full = jnp.dot(probs.reshape(BL, H), hm,
                     preferred_element_type=jnp.float32).reshape(B, L, E)   # broadcast per head
    ctx = jnp.sum(p_full * v, axis=1)                                       # (B, E)
    attn = (jnp.dot(ctx.astype(jnp.bfloat16), wo_ref[...],
                    preferred_element_type=jnp.float32) + bo_ref[...])      # (B, E)

    # ---------------- fc head: Linear -> LayerNorm -> GELU -> Linear -> Sigmoid ----------------
    h1 = (jnp.dot(attn.astype(jnp.bfloat16), wf1_ref[...],
                  preferred_element_type=jnp.float32) + bf1_ref[...])       # (B, 128)
    mu = jnp.mean(h1, axis=-1, keepdims=True)
    var = jnp.mean((h1 - mu) * (h1 - mu), axis=-1, keepdims=True)
    hn = (h1 - mu) * jax.lax.rsqrt(var + LN_EPS)
    hn = _gelu(hn * lng_ref[...] + lnb_ref[...])
    # Linear(128,1) as a VPU multiply + lane reduction (avoids an N=1 MXU pass)
    logit = jnp.sum(hn * wf2_ref[...], axis=-1, keepdims=True) + bf2_ref[...]
    out_ref[...] = 1.0 / (1.0 + jnp.exp(-logit))


# ---------------------------------------------------------------------------
# Host-side constants (conv shift matrices, head mask) and parameter init
# ---------------------------------------------------------------------------
def _build_shift_mats(batch, seq, dilations):
    # shifts[layer, 0] @ t0 gives per-batch "shift forward by dil" (zero-fill at the left edge),
    # shifts[layer, 1] @ t2 gives "shift backward by dil" (zero-fill at the right edge).
    idx = jnp.arange(batch * seq)
    b_i = idx // seq
    l_i = idx % seq
    same_b = b_i[:, None] == b_i[None, :]
    mats = []
    for d in dilations:
        plus = (same_b & (l_i[None, :] == l_i[:, None] - d)).astype(jnp.float32)
        minus = (same_b & (l_i[None, :] == l_i[:, None] + d)).astype(jnp.float32)
        mats.append(jnp.stack([plus, minus]))
    return jnp.stack(mats)                     # (n_layers, 2, B*L, B*L)


def _build_head_mask(num_heads, embed):
    dh = embed // num_heads
    d = jnp.arange(embed)
    h = jnp.arange(num_heads)
    return (d[None, :] // dh == h[:, None]).astype(jnp.float32)   # (H, E)


def init_params(key, input_size, batch, seq):
    counter = itertools.count(1)

    def nrm(shape, s=0.05, dtype=jnp.float32):
        k = jax.random.fold_in(key, next(counter))
        return (s * jax.random.normal(k, shape, jnp.float32)).astype(dtype)

    E, H = EMBED, NUM_HEADS
    bn_scale = 1.0 / math.sqrt(1.0 + BN_EPS)   # eval-mode BN: running_mean=0, running_var=1

    p = {}
    # TCN layer 1: Conv1d(input_size, 64, k=3, pad=1) + BN(64)
    p['w1'] = nrm((3, input_size, 64), dtype=jnp.bfloat16)
    p['b1'] = nrm((1, 64))
    p['scale1'] = (1.0 + nrm((1, 64))) * bn_scale
    p['shift1'] = nrm((1, 64))
    # TCN layer 2: Conv1d(64, 128, k=3, dil=2, pad=2) + BN(128)
    p['w2'] = nrm((3, 64, 128), dtype=jnp.bfloat16)
    p['b2'] = nrm((1, 128))
    p['scale2'] = (1.0 + nrm((1, 128))) * bn_scale
    p['shift2'] = nrm((1, 128))
    # TCN layer 3: Conv1d(128, 256, k=3, dil=4, pad=4) + BN(256)
    p['w3'] = nrm((3, 128, 256), dtype=jnp.bfloat16)
    p['b3'] = nrm((1, 256))
    p['scale3'] = (1.0 + nrm((1, 256))) * bn_scale
    p['shift3'] = nrm((1, 256))
    # MultiheadAttention(256, 4): fused QKV in-proj + out-proj
    p['wqkv'] = nrm((E, 3 * E), dtype=jnp.bfloat16)
    p['bqkv'] = nrm((1, 3 * E))
    p['wo'] = nrm((E, E), dtype=jnp.bfloat16)
    p['bo'] = nrm((1, E))
    # fc head: Linear(256,128) -> LayerNorm(128) -> GELU -> Linear(128,1) -> Sigmoid
    p['w_fc1'] = nrm((E, 128), dtype=jnp.bfloat16)
    p['b_fc1'] = nrm((1, 128))
    p['ln_g'] = 1.0 + nrm((1, 128))
    p['ln_b'] = nrm((1, 128))
    p['w_fc2'] = nrm((1, 128))        # nn.Linear(128,1).weight, applied as VPU reduce
    p['b_fc2'] = nrm((1, 1))
    # deterministic structural constants
    p['shifts'] = _build_shift_mats(batch, seq, DILATIONS)
    p['head_mask'] = _build_head_mask(H, E)
    return p


@jax.jit
def forward(x, p):
    # x: (B, S, input_size) — matches the PyTorch module's input before permute(0, 2, 1)
    B = x.shape[0]
    args = (x,
            p['w1'], p['b1'], p['scale1'], p['shift1'],
            p['w2'], p['b2'], p['scale2'], p['shift2'],
            p['w3'], p['b3'], p['scale3'], p['shift3'],
            p['shifts'], p['head_mask'],
            p['wqkv'], p['bqkv'], p['wo'], p['bo'],
            p['w_fc1'], p['b_fc1'], p['ln_g'], p['ln_b'], p['w_fc2'], p['b_fc2'])
    return pl.pallas_call(
        multi_temporal_kernel,
        out_shape=jax.ShapeDtypeStruct((B, 1), jnp.float32),
        in_specs=[pl.BlockSpec(memory_space=pltpu.MemorySpace.VMEM)] * len(args),
        out_specs=pl.BlockSpec(memory_space=pltpu.MemorySpace.VMEM),
    )(*args)


if __name__ == "__main__":
    key = jax.random.PRNGKey(0)
    k_param, k_x = jax.random.split(key)

    batch, seq, input_size = 2, 8, 4
    params = init_params(k_param, input_size, batch, seq)
    x = jax.random.normal(k_x, (batch, seq, input_size), jnp.float32)

    out = jax.block_until_ready(forward(x, params))
    assert out.shape == (batch, 1), out.shape
    assert bool(jnp.all(jnp.isfinite(out)))
    assert bool(jnp.all((out >= 0.0) & (out <= 1.0)))  # sigmoid output
    print("KERNEL_OK")
</pallas_src>

<mosaic_0001>
module attributes {stable_mosaic.version = 11 : i64} {
  func.func @multi_temporal_kernel(%arg0: memref<2x8x4xf32, #tpu.memory_space<vmem>>, %arg1: memref<3x4x64xbf16, #tpu.memory_space<vmem>>, %arg2: memref<1x64xf32, #tpu.memory_space<vmem>>, %arg3: memref<1x64xf32, #tpu.memory_space<vmem>>, %arg4: memref<1x64xf32, #tpu.memory_space<vmem>>, %arg5: memref<3x64x128xbf16, #tpu.memory_space<vmem>>, %arg6: memref<1x128xf32, #tpu.memory_space<vmem>>, %arg7: memref<1x128xf32, #tpu.memory_space<vmem>>, %arg8: memref<1x128xf32, #tpu.memory_space<vmem>>, %arg9: memref<3x128x256xbf16, #tpu.memory_space<vmem>>, %arg10: memref<1x256xf32, #tpu.memory_space<vmem>>, %arg11: memref<1x256xf32, #tpu.memory_space<vmem>>, %arg12: memref<1x256xf32, #tpu.memory_space<vmem>>, %arg13: memref<3x2x16x16xf32, #tpu.memory_space<vmem>>, %arg14: memref<4x256xf32, #tpu.memory_space<vmem>>, %arg15: memref<256x768xbf16, #tpu.memory_space<vmem>>, %arg16: memref<1x768xf32, #tpu.memory_space<vmem>>, %arg17: memref<256x256xbf16, #tpu.memory_space<vmem>>, %arg18: memref<1x256xf32, #tpu.memory_space<vmem>>, %arg19: memref<256x128xbf16, #tpu.memory_space<vmem>>, %arg20: memref<1x128xf32, #tpu.memory_space<vmem>>, %arg21: memref<1x128xf32, #tpu.memory_space<vmem>>, %arg22: memref<1x128xf32, #tpu.memory_space<vmem>>, %arg23: memref<1x128xf32, #tpu.memory_space<vmem>>, %arg24: memref<1x1xf32, #tpu.memory_space<vmem>>, %arg25: memref<2x1xf32, #tpu.memory_space<vmem>>) attributes {dimension_semantics = [], scalar_prefetch = 0 : i64, scratch_operands = 0 : i64, tpu.core_type = #tpu.core_type<tc>} {
    %c0 = arith.constant 0 : index
    %c0_0 = arith.constant 0 : index
    %c0_1 = arith.constant 0 : index
    %0 = vector.load %arg0[%c0, %c0_0, %c0_1] : memref<2x8x4xf32, #tpu.memory_space<vmem>>, vector<2x8x4xf32>
    %1 = vector.shape_cast %0 : vector<2x8x4xf32> to vector<16x4xf32>
    %2 = arith.truncf %1 : vector<16x4xf32> to vector<16x4xbf16>
    %c0_2 = arith.constant 0 : index
    %c0_3 = arith.constant 0 : index
    %c0_4 = arith.constant 0 : index
    %3 = vector.load %arg1[%c0_2, %c0_3, %c0_4] : memref<3x4x64xbf16, #tpu.memory_space<vmem>>, vector<1x4x64xbf16>
    %4 = vector.shape_cast %3 : vector<1x4x64xbf16> to vector<4x64xbf16>
    %cst = arith.constant dense<0.000000e+00> : vector<16x64xf32>
    %5 = tpu.matmul %2, %4, %cst {dimension_numbers = #tpu.dot_dimension_numbers<[1], [0], [0], [1], [0, 0, 1, 1], [], []>} : vector<16x4xbf16>, vector<4x64xbf16>, vector<16x64xf32> -> vector<16x64xf32>
    %c1 = arith.constant 1 : index
    %c0_5 = arith.constant 0 : index
    %c0_6 = arith.constant 0 : index
    %6 = vector.load %arg1[%c1, %c0_5, %c0_6] : memref<3x4x64xbf16, #tpu.memory_space<vmem>>, vector<1x4x64xbf16>
    %7 = vector.shape_cast %6 : vector<1x4x64xbf16> to vector<4x64xbf16>
    %cst_7 = arith.constant dense<0.000000e+00> : vector<16x64xf32>
    %8 = tpu.matmul %2, %7, %cst_7 {dimension_numbers = #tpu.dot_dimension_numbers<[1], [0], [0], [1], [0, 0, 1, 1], [], []>} : vector<16x4xbf16>, vector<4x64xbf16>, vector<16x64xf32> -> vector<16x64xf32>
    %c2 = arith.constant 2 : index
    %c0_8 = arith.constant 0 : index
    %c0_9 = arith.constant 0 : index
    %9 = vector.load %arg1[%c2, %c0_8, %c0_9] : memref<3x4x64xbf16, #tpu.memory_space<vmem>>, vector<1x4x64xbf16>
    %10 = vector.shape_cast %9 : vector<1x4x64xbf16> to vector<4x64xbf16>
    %cst_10 = arith.constant dense<0.000000e+00> : vector<16x64xf32>
    %11 = tpu.matmul %2, %10, %cst_10 {dimension_numbers = #tpu.dot_dimension_numbers<[1], [0], [0], [1], [0, 0, 1, 1], [], []>} : vector<16x4xbf16>, vector<4x64xbf16>, vector<16x64xf32> -> vector<16x64xf32>
    %c0_11 = arith.constant 0 : index
    %c0_12 = arith.constant 0 : index
    %c0_13 = arith.constant 0 : index
    %c0_14 = arith.constant 0 : index
    %12 = vector.load %arg13[%c0_11, %c0_12, %c0_13, %c0_14] : memref<3x2x16x16xf32, #tpu.memory_space<vmem>>, vector<1x1x16x16xf32>
    %13 = vector.shape_cast %12 : vector<1x1x16x16xf32> to vector<16x16xf32>
    %c0_15 = arith.constant 0 : index
    %c1_16 = arith.constant 1 : index
    %c0_17 = arith.constant 0 : index
    %c0_18 = arith.constant 0 : index
    %14 = vector.load %arg13[%c0_15, %c1_16, %c0_17, %c0_18] : memref<3x2x16x16xf32, #tpu.memory_space<vmem>>, vector<1x1x16x16xf32>
    %15 = vector.shape_cast %14 : vector<1x1x16x16xf32> to vector<16x16xf32>
    %cst_19 = arith.constant dense<0.000000e+00> : vector<16x64xf32>
    %16 = tpu.matmul %13, %5, %cst_19 {dimension_numbers = #tpu.dot_dimension_numbers<[1], [0], [0], [1], [0, 0, 1, 1], [], []>} : vector<16x16xf32>, vector<16x64xf32>, vector<16x64xf32> -> vector<16x64xf32>
    %17 = arith.addf %8, %16 : vector<16x64xf32>
    %cst_20 = arith.constant dense<0.000000e+00> : vector<16x64xf32>
    %18 = tpu.matmul %15, %11, %cst_20 {dimension_numbers = #tpu.dot_dimension_numbers<[1], [0], [0], [1], [0, 0, 1, 1], [], []>} : vector<16x16xf32>, vector<16x64xf32>, vector<16x64xf32> -> vector<16x64xf32>
    %19 = arith.addf %17, %18 : vector<16x64xf32>
    %c0_21 = arith.constant 0 : index
    %c0_22 = arith.constant 0 : index
    %20 = vector.load %arg2[%c0_21, %c0_22] : memref<1x64xf32, #tpu.memory_space<vmem>>, vector<1x64xf32>
    %21 = vector.broadcast %20 : vector<1x64xf32> to vector<16x64xf32>
    %22 = arith.addf %19, %21 : vector<16x64xf32>
    %c0_23 = arith.constant 0 : index
    %c0_24 = arith.constant 0 : index
    %23 = vector.load %arg3[%c0_23, %c0_24] : memref<1x64xf32, #tpu.memory_space<vmem>>, vector<1x64xf32>
    %24 = vector.broadcast %23 : vector<1x64xf32> to vector<16x64xf32>
    %25 = arith.mulf %22, %24 : vector<16x64xf32>
    %c0_25 = arith.constant 0 : index
    %c0_26 = arith.constant 0 : index
    %26 = vector.load %arg4[%c0_25, %c0_26] : memref<1x64xf32, #tpu.memory_space<vmem>>, vector<1x64xf32>
    %27 = vector.broadcast %26 : vector<1x64xf32> to vector<16x64xf32>
    %28 = arith.addf %25, %27 : vector<16x64xf32>
    %cst_27 = arith.constant 5.000000e-01 : f32
    %29 = vector.broadcast %cst_27 : f32 to vector<16x64xf32>
    %30 = arith.mulf %29, %28 : vector<16x64xf32>
    %cst_28 = arith.constant 0.707106769 : f32
    %31 = vector.broadcast %cst_28 : f32 to vector<16x64xf32>
    %32 = arith.mulf %28, %31 : vector<16x64xf32>
    %cst_29 = arith.constant 0.000000e+00 : f32
    %33 = vector.broadcast %cst_29 : f32 to vector<16x64xf32>
    %34 = arith.cmpf olt, %32, %33 : vector<16x64xf32>
    %cst_30 = arith.constant -1.000000e+00 : f32
    %cst_31 = arith.constant 1.000000e+00 : f32
    %35 = vector.broadcast %cst_30 : f32 to vector<16x64xf32>
    %36 = vector.broadcast %cst_31 : f32 to vector<16x64xf32>
    %37 = arith.select %34, %35, %36 : vector<16x64xi1>, vector<16x64xf32>
    %38 = math.absf %32 : vector<16x64xf32>
    %cst_32 = arith.constant 0.327591091 : f32
    %39 = vector.broadcast %cst_32 : f32 to vector<16x64xf32>
    %40 = arith.mulf %39, %38 : vector<16x64xf32>
    %cst_33 = arith.constant 1.000000e+00 : f32
    %41 = vector.broadcast %cst_33 : f32 to vector<16x64xf32>
    %42 = arith.addf %41, %40 : vector<16x64xf32>
    %cst_34 = arith.constant 1.000000e+00 : f32
    %43 = vector.broadcast %cst_34 : f32 to vector<16x64xf32>
    %44 = arith.divf %43, %42 : vector<16x64xf32>
    %cst_35 = arith.constant 1.06140542 : f32
    %45 = vector.broadcast %cst_35 : f32 to vector<16x64xf32>
    %46 = arith.mulf %45, %44 : vector<16x64xf32>
    %cst_36 = arith.constant -1.45315206 : f32
    %47 = vector.broadcast %cst_36 : f32 to vector<16x64xf32>
    %48 = arith.addf %46, %47 : vector<16x64xf32>
    %49 = arith.mulf %48, %44 : vector<16x64xf32>
    %cst_37 = arith.constant 1.42141378 : f32
    %50 = vector.broadcast %cst_37 : f32 to vector<16x64xf32>
    %51 = arith.addf %49, %50 : vector<16x64xf32>
    %52 = arith.mulf %51, %44 : vector<16x64xf32>
    %cst_38 = arith.constant -0.284496725 : f32
    %53 = vector.broadcast %cst_38 : f32 to vector<16x64xf32>
    %54 = arith.addf %52, %53 : vector<16x64xf32>
    %55 = arith.mulf %54, %44 : vector<16x64xf32>
    %cst_39 = arith.constant 0.254829586 : f32
    %56 = vector.broadcast %cst_39 : f32 to vector<16x64xf32>
    %57 = arith.addf %55, %56 : vector<16x64xf32>
    %58 = arith.mulf %57, %44 : vector<16x64xf32>
    %cst_40 = arith.constant 0.000000e+00 : f32
    %59 = vector.broadcast %cst_40 : f32 to vector<16x64xf32>
    %60 = arith.subf %59, %38 : vector<16x64xf32>
    %61 = arith.mulf %60, %38 : vector<16x64xf32>
    %62 = math.exp %61 : vector<16x64xf32>
    %63 = arith.mulf %58, %62 : vector<16x64xf32>
    %cst_41 = arith.constant 1.000000e+00 : f32
    %64 = vector.broadcast %cst_41 : f32 to vector<16x64xf32>
    %65 = arith.subf %64, %63 : vector<16x64xf32>
    %66 = arith.mulf %37, %65 : vector<16x64xf32>
    %cst_42 = arith.constant 1.000000e+00 : f32
    %67 = vector.broadcast %cst_42 : f32 to vector<16x64xf32>
    %68 = arith.addf %67, %66 : vector<16x64xf32>
    %69 = arith.mulf %30, %68 : vector<16x64xf32>
    %70 = arith.truncf %69 : vector<16x64xf32> to vector<16x64xbf16>
    %c0_43 = arith.constant 0 : index
    %c0_44 = arith.constant 0 : index
    %c0_45 = arith.constant 0 : index
    %71 = vector.load %arg5[%c0_43, %c0_44, %c0_45] : memref<3x64x128xbf16, #tpu.memory_space<vmem>>, vector<1x64x128xbf16>
    %72 = vector.shape_cast %71 : vector<1x64x128xbf16> to vector<64x128xbf16>
    %cst_46 = arith.constant dense<0.000000e+00> : vector<16x128xf32>
    %73 = tpu.matmul %70, %72, %cst_46 {dimension_numbers = #tpu.dot_dimension_numbers<[1], [0], [0], [1], [0, 0, 1, 1], [], []>} : vector<16x64xbf16>, vector<64x128xbf16>, vector<16x128xf32> -> vector<16x128xf32>
    %c1_47 = arith.constant 1 : index
    %c0_48 = arith.constant 0 : index
    %c0_49 = arith.constant 0 : index
    %74 = vector.load %arg5[%c1_47, %c0_48, %c0_49] : memref<3x64x128xbf16, #tpu.memory_space<vmem>>, vector<1x64x128xbf16>
    %75 = vector.shape_cast %74 : vector<1x64x128xbf16> to vector<64x128xbf16>
    %cst_50 = arith.constant dense<0.000000e+00> : vector<16x128xf32>
    %76 = tpu.matmul %70, %75, %cst_50 {dimension_numbers = #tpu.dot_dimension_numbers<[1], [0], [0], [1], [0, 0, 1, 1], [], []>} : vector<16x64xbf16>, vector<64x128xbf16>, vector<16x128xf32> -> vector<16x128xf32>
    %c2_51 = arith.constant 2 : index
    %c0_52 = arith.constant 0 : index
    %c0_53 = arith.constant 0 : index
    %77 = vector.load %arg5[%c2_51, %c0_52, %c0_53] : memref<3x64x128xbf16, #tpu.memory_space<vmem>>, vector<1x64x128xbf16>
    %78 = vector.shape_cast %77 : vector<1x64x128xbf16> to vector<64x128xbf16>
    %cst_54 = arith.constant dense<0.000000e+00> : vector<16x128xf32>
    %79 = tpu.matmul %70, %78, %cst_54 {dimension_numbers = #tpu.dot_dimension_numbers<[1], [0], [0], [1], [0, 0, 1, 1], [], []>} : vector<16x64xbf16>, vector<64x128xbf16>, vector<16x128xf32> -> vector<16x128xf32>
    %c1_55 = arith.constant 1 : index
    %c0_56 = arith.constant 0 : index
    %c0_57 = arith.constant 0 : index
    %c0_58 = arith.constant 0 : index
    %80 = vector.load %arg13[%c1_55, %c0_56, %c0_57, %c0_58] : memref<3x2x16x16xf32, #tpu.memory_space<vmem>>, vector<1x1x16x16xf32>
    %81 = vector.shape_cast %80 : vector<1x1x16x16xf32> to vector<16x16xf32>
    %c1_59 = arith.constant 1 : index
    %c1_60 = arith.constant 1 : index
    %c0_61 = arith.constant 0 : index
    %c0_62 = arith.constant 0 : index
    %82 = vector.load %arg13[%c1_59, %c1_60, %c0_61, %c0_62] : memref<3x2x16x16xf32, #tpu.memory_space<vmem>>, vector<1x1x16x16xf32>
    %83 = vector.shape_cast %82 : vector<1x1x16x16xf32> to vector<16x16xf32>
    %cst_63 = arith.constant dense<0.000000e+00> : vector<16x128xf32>
    %84 = tpu.matmul %81, %73, %cst_63 {dimension_numbers = #tpu.dot_dimension_numbers<[1], [0], [0], [1], [0, 0, 1, 1], [], []>} : vector<16x16xf32>, vector<16x128xf32>, vector<16x128xf32> -> vector<16x128xf32>
    %85 = arith.addf %76, %84 : vector<16x128xf32>
    %cst_64 = arith.constant dense<0.000000e+00> : vector<16x128xf32>
    %86 = tpu.matmul %83, %79, %cst_64 {dimension_numbers = #tpu.dot_dimension_numbers<[1], [0], [0], [1], [0, 0, 1, 1], [], []>} : vector<16x16xf32>, vector<16x128xf32>, vector<16x128xf32> -> vector<16x128xf32>
    %87 = arith.addf %85, %86 : vector<16x128xf32>
    %c0_65 = arith.constant 0 : index
    %c0_66 = arith.constant 0 : index
    %88 = vector.load %arg6[%c0_65, %c0_66] : memref<1x128xf32, #tpu.memory_space<vmem>>, vector<1x128xf32>
    %89 = vector.broadcast %88 : vector<1x128xf32> to vector<16x128xf32>
    %90 = arith.addf %87, %89 : vector<16x128xf32>
    %c0_67 = arith.constant 0 : index
    %c0_68 = arith.constant 0 : index
    %91 = vector.load %arg7[%c0_67, %c0_68] : memref<1x128xf32, #tpu.memory_space<vmem>>, vector<1x128xf32>
    %92 = vector.broadcast %91 : vector<1x128xf32> to vector<16x128xf32>
    %93 = arith.mulf %90, %92 : vector<16x128xf32>
    %c0_69 = arith.constant 0 : index
    %c0_70 = arith.constant 0 : index
    %94 = vector.load %arg8[%c0_69, %c0_70] : memref<1x128xf32, #tpu.memory_space<vmem>>, vector<1x128xf32>
    %95 = vector.broadcast %94 : vector<1x128xf32> to vector<16x128xf32>
    %96 = arith.addf %93, %95 : vector<16x128xf32>
    %cst_71 = arith.constant 5.000000e-01 : f32
    %97 = vector.broadcast %cst_71 : f32 to vector<16x128xf32>
    %98 = arith.mulf %97, %96 : vector<16x128xf32>
    %cst_72 = arith.constant 0.707106769 : f32
    %99 = vector.broadcast %cst_72 : f32 to vector<16x128xf32>
    %100 = arith.mulf %96, %99 : vector<16x128xf32>
    %cst_73 = arith.constant 0.000000e+00 : f32
    %101 = vector.broadcast %cst_73 : f32 to vector<16x128xf32>
    %102 = arith.cmpf olt, %100, %101 : vector<16x128xf32>
    %cst_74 = arith.constant -1.000000e+00 : f32
    %cst_75 = arith.constant 1.000000e+00 : f32
    %103 = vector.broadcast %cst_74 : f32 to vector<16x128xf32>
    %104 = vector.broadcast %cst_75 : f32 to vector<16x128xf32>
    %105 = arith.select %102, %103, %104 : vector<16x128xi1>, vector<16x128xf32>
    %106 = math.absf %100 : vector<16x128xf32>
    %cst_76 = arith.constant 0.327591091 : f32
    %107 = vector.broadcast %cst_76 : f32 to vector<16x128xf32>
    %108 = arith.mulf %107, %106 : vector<16x128xf32>
    %cst_77 = arith.constant 1.000000e+00 : f32
    %109 = vector.broadcast %cst_77 : f32 to vector<16x128xf32>
    %110 = arith.addf %109, %108 : vector<16x128xf32>
    %cst_78 = arith.constant 1.000000e+00 : f32
    %111 = vector.broadcast %cst_78 : f32 to vector<16x128xf32>
    %112 = arith.divf %111, %110 : vector<16x128xf32>
    %cst_79 = arith.constant 1.06140542 : f32
    %113 = vector.broadcast %cst_79 : f32 to vector<16x128xf32>
    %114 = arith.mulf %113, %112 : vector<16x128xf32>
    %cst_80 = arith.constant -1.45315206 : f32
    %115 = vector.broadcast %cst_80 : f32 to vector<16x128xf32>
    %116 = arith.addf %114, %115 : vector<16x128xf32>
    %117 = arith.mulf %116, %112 : vector<16x128xf32>
    %cst_81 = arith.constant 1.42141378 : f32
    %118 = vector.broadcast %cst_81 : f32 to vector<16x128xf32>
    %119 = arith.addf %117, %118 : vector<16x128xf32>
    %120 = arith.mulf %119, %112 : vector<16x128xf32>
    %cst_82 = arith.constant -0.284496725 : f32
    %121 = vector.broadcast %cst_82 : f32 to vector<16x128xf32>
    %122 = arith.addf %120, %121 : vector<16x128xf32>
    %123 = arith.mulf %122, %112 : vector<16x128xf32>
    %cst_83 = arith.constant 0.254829586 : f32
    %124 = vector.broadcast %cst_83 : f32 to vector<16x128xf32>
    %125 = arith.addf %123, %124 : vector<16x128xf32>
    %126 = arith.mulf %125, %112 : vector<16x128xf32>
    %cst_84 = arith.constant 0.000000e+00 : f32
    %127 = vector.broadcast %cst_84 : f32 to vector<16x128xf32>
    %128 = arith.subf %127, %106 : vector<16x128xf32>
    %129 = arith.mulf %128, %106 : vector<16x128xf32>
    %130 = math.exp %129 : vector<16x128xf32>
    %131 = arith.mulf %126, %130 : vector<16x128xf32>
    %cst_85 = arith.constant 1.000000e+00 : f32
    %132 = vector.broadcast %cst_85 : f32 to vector<16x128xf32>
    %133 = arith.subf %132, %131 : vector<16x128xf32>
    %134 = arith.mulf %105, %133 : vector<16x128xf32>
    %cst_86 = arith.constant 1.000000e+00 : f32
    %135 = vector.broadcast %cst_86 : f32 to vector<16x128xf32>
    %136 = arith.addf %135, %134 : vector<16x128xf32>
    %137 = arith.mulf %98, %136 : vector<16x128xf32>
    %138 = arith.truncf %137 : vector<16x128xf32> to vector<16x128xbf16>
    %c0_87 = arith.constant 0 : index
    %c0_88 = arith.constant 0 : index
    %c0_89 = arith.constant 0 : index
    %139 = vector.load %arg9[%c0_87, %c0_88, %c0_89] : memref<3x128x256xbf16, #tpu.memory_space<vmem>>, vector<1x128x256xbf16>
    %140 = vector.shape_cast %139 : vector<1x128x256xbf16> to vector<128x256xbf16>
    %cst_90 = arith.constant dense<0.000000e+00> : vector<16x256xf32>
    %141 = tpu.matmul %138, %140, %cst_90 {dimension_numbers = #tpu.dot_dimension_numbers<[1], [0], [0], [1], [0, 0, 1, 1], [], []>} : vector<16x128xbf16>, vector<128x256xbf16>, vector<16x256xf32> -> vector<16x256xf32>
    %c1_91 = arith.constant 1 : index
    %c0_92 = arith.constant 0 : index
    %c0_93 = arith.constant 0 : index
    %142 = vector.load %arg9[%c1_91, %c0_92, %c0_93] : memref<3x128x256xbf16, #tpu.memory_space<vmem>>, vector<1x128x256xbf16>
    %143 = vector.shape_cast %142 : vector<1x128x256xbf16> to vector<128x256xbf16>
    %cst_94 = arith.constant dense<0.000000e+00> : vector<16x256xf32>
    %144 = tpu.matmul %138, %143, %cst_94 {dimension_numbers = #tpu.dot_dimension_numbers<[1], [0], [0], [1], [0, 0, 1, 1], [], []>} : vector<16x128xbf16>, vector<128x256xbf16>, vector<16x256xf32> -> vector<16x256xf32>
    %c2_95 = arith.constant 2 : index
    %c0_96 = arith.constant 0 : index
    %c0_97 = arith.constant 0 : index
    %145 = vector.load %arg9[%c2_95, %c0_96, %c0_97] : memref<3x128x256xbf16, #tpu.memory_space<vmem>>, vector<1x128x256xbf16>
    %146 = vector.shape_cast %145 : vector<1x128x256xbf16> to vector<128x256xbf16>
    %cst_98 = arith.constant dense<0.000000e+00> : vector<16x256xf32>
    %147 = tpu.matmul %138, %146, %cst_98 {dimension_numbers = #tpu.dot_dimension_numbers<[1], [0], [0], [1], [0, 0, 1, 1], [], []>} : vector<16x128xbf16>, vector<128x256xbf16>, vector<16x256xf32> -> vector<16x256xf32>
    %c2_99 = arith.constant 2 : index
    %c0_100 = arith.constant 0 : index
    %c0_101 = arith.constant 0 : index
    %c0_102 = arith.constant 0 : index
    %148 = vector.load %arg13[%c2_99, %c0_100, %c0_101, %c0_102] : memref<3x2x16x16xf32, #tpu.memory_space<vmem>>, vector<1x1x16x16xf32>
    %149 = vector.shape_cast %148 : vector<1x1x16x16xf32> to vector<16x16xf32>
    %c2_103 = arith.constant 2 : index
    %c1_104 = arith.constant 1 : index
    %c0_105 = arith.constant 0 : index
    %c0_106 = arith.constant 0 : index
    %150 = vector.load %arg13[%c2_103, %c1_104, %c0_105, %c0_106] : memref<3x2x16x16xf32, #tpu.memory_space<vmem>>, vector<1x1x16x16xf32>
    %151 = vector.shape_cast %150 : vector<1x1x16x16xf32> to vector<16x16xf32>
    %cst_107 = arith.constant dense<0.000000e+00> : vector<16x256xf32>
    %152 = tpu.matmul %149, %141, %cst_107 {dimension_numbers = #tpu.dot_dimension_numbers<[1], [0], [0], [1], [0, 0, 1, 1], [], []>} : vector<16x16xf32>, vector<16x256xf32>, vector<16x256xf32> -> vector<16x256xf32>
    %153 = arith.addf %144, %152 : vector<16x256xf32>
    %cst_108 = arith.constant dense<0.000000e+00> : vector<16x256xf32>
    %154 = tpu.matmul %151, %147, %cst_108 {dimension_numbers = #tpu.dot_dimension_numbers<[1], [0], [0], [1], [0, 0, 1, 1], [], []>} : vector<16x16xf32>, vector<16x256xf32>, vector<16x256xf32> -> vector<16x256xf32>
    %155 = arith.addf %153, %154 : vector<16x256xf32>
    %c0_109 = arith.constant 0 : index
    %c0_110 = arith.constant 0 : index
    %156 = vector.load %arg10[%c0_109, %c0_110] : memref<1x256xf32, #tpu.memory_space<vmem>>, vector<1x256xf32>
    %157 = vector.broadcast %156 : vector<1x256xf32> to vector<16x256xf32>
    %158 = arith.addf %155, %157 : vector<16x256xf32>
    %c0_111 = arith.constant 0 : index
    %c0_112 = arith.constant 0 : index
    %159 = vector.load %arg11[%c0_111, %c0_112] : memref<1x256xf32, #tpu.memory_space<vmem>>, vector<1x256xf32>
    %160 = vector.broadcast %159 : vector<1x256xf32> to vector<16x256xf32>
    %161 = arith.mulf %158, %160 : vector<16x256xf32>
    %c0_113 = arith.constant 0 : index
    %c0_114 = arith.constant 0 : index
    %162 = vector.load %arg12[%c0_113, %c0_114] : memref<1x256xf32, #tpu.memory_space<vmem>>, vector<1x256xf32>
    %163 = vector.broadcast %162 : vector<1x256xf32> to vector<16x256xf32>
    %164 = arith.addf %161, %163 : vector<16x256xf32>
    %cst_115 = arith.constant 5.000000e-01 : f32
    %165 = vector.broadcast %cst_115 : f32 to vector<16x256xf32>
    %166 = arith.mulf %165, %164 : vector<16x256xf32>
    %cst_116 = arith.constant 0.707106769 : f32
    %167 = vector.broadcast %cst_116 : f32 to vector<16x256xf32>
    %168 = arith.mulf %164, %167 : vector<16x256xf32>
    %cst_117 = arith.constant 0.000000e+00 : f32
    %169 = vector.broadcast %cst_117 : f32 to vector<16x256xf32>
    %170 = arith.cmpf olt, %168, %169 : vector<16x256xf32>
    %cst_118 = arith.constant -1.000000e+00 : f32
    %cst_119 = arith.constant 1.000000e+00 : f32
    %171 = vector.broadcast %cst_118 : f32 to vector<16x256xf32>
    %172 = vector.broadcast %cst_119 : f32 to vector<16x256xf32>
    %173 = arith.select %170, %171, %172 : vector<16x256xi1>, vector<16x256xf32>
    %174 = math.absf %168 : vector<16x256xf32>
    %cst_120 = arith.constant 0.327591091 : f32
    %175 = vector.broadcast %cst_120 : f32 to vector<16x256xf32>
    %176 = arith.mulf %175, %174 : vector<16x256xf32>
    %cst_121 = arith.constant 1.000000e+00 : f32
    %177 = vector.broadcast %cst_121 : f32 to vector<16x256xf32>
    %178 = arith.addf %177, %176 : vector<16x256xf32>
    %cst_122 = arith.constant 1.000000e+00 : f32
    %179 = vector.broadcast %cst_122 : f32 to vector<16x256xf32>
    %180 = arith.divf %179, %178 : vector<16x256xf32>
    %cst_123 = arith.constant 1.06140542 : f32
    %181 = vector.broadcast %cst_123 : f32 to vector<16x256xf32>
    %182 = arith.mulf %181, %180 : vector<16x256xf32>
    %cst_124 = arith.constant -1.45315206 : f32
    %183 = vector.broadcast %cst_124 : f32 to vector<16x256xf32>
    %184 = arith.addf %182, %183 : vector<16x256xf32>
    %185 = arith.mulf %184, %180 : vector<16x256xf32>
    %cst_125 = arith.constant 1.42141378 : f32
    %186 = vector.broadcast %cst_125 : f32 to vector<16x256xf32>
    %187 = arith.addf %185, %186 : vector<16x256xf32>
    %188 = arith.mulf %187, %180 : vector<16x256xf32>
    %cst_126 = arith.constant -0.284496725 : f32
    %189 = vector.broadcast %cst_126 : f32 to vector<16x256xf32>
    %190 = arith.addf %188, %189 : vector<16x256xf32>
    %191 = arith.mulf %190, %180 : vector<16x256xf32>
    %cst_127 = arith.constant 0.254829586 : f32
    %192 = vector.broadcast %cst_127 : f32 to vector<16x256xf32>
    %193 = arith.addf %191, %192 : vector<16x256xf32>
    %194 = arith.mulf %193, %180 : vector<16x256xf32>
    %cst_128 = arith.constant 0.000000e+00 : f32
    %195 = vector.broadcast %cst_128 : f32 to vector<16x256xf32>
    %196 = arith.subf %195, %174 : vector<16x256xf32>
    %197 = arith.mulf %196, %174 : vector<16x256xf32>
    %198 = math.exp %197 : vector<16x256xf32>
    %199 = arith.mulf %194, %198 : vector<16x256xf32>
    %cst_129 = arith.constant 1.000000e+00 : f32
    %200 = vector.broadcast %cst_129 : f32 to vector<16x256xf32>
    %201 = arith.subf %200, %199 : vector<16x256xf32>
    %202 = arith.mulf %173, %201 : vector<16x256xf32>
    %cst_130 = arith.constant 1.000000e+00 : f32
    %203 = vector.broadcast %cst_130 : f32 to vector<16x256xf32>
    %204 = arith.addf %203, %202 : vector<16x256xf32>
    %205 = arith.mulf %166, %204 : vector<16x256xf32>
    %206 = arith.truncf %205 : vector<16x256xf32> to vector<16x256xbf16>
    %c0_131 = arith.constant 0 : index
    %c0_132 = arith.constant 0 : index
    %207 = vector.load %arg15[%c0_131, %c0_132] : memref<256x768xbf16, #tpu.memory_space<vmem>>, vector<256x768xbf16>
    %cst_133 = arith.constant dense<0.000000e+00> : vector<16x768xf32>
    %208 = tpu.matmul %206, %207, %cst_133 {dimension_numbers = #tpu.dot_dimension_numbers<[1], [0], [0], [1], [0, 0, 1, 1], [], []>} : vector<16x256xbf16>, vector<256x768xbf16>, vector<16x768xf32> -> vector<16x768xf32>
    %c0_134 = arith.constant 0 : index
    %c0_135 = arith.constant 0 : index
    %209 = vector.load %arg16[%c0_134, %c0_135] : memref<1x768xf32, #tpu.memory_space<vmem>>, vector<1x768xf32>
    %210 = vector.broadcast %209 : vector<1x768xf32> to vector<16x768xf32>
    %211 = arith.addf %208, %210 : vector<16x768xf32>
    %212 = vector.shape_cast %211 : vector<16x768xf32> to vector<2x8x768xf32>
    %213 = vector.extract_strided_slice %212 {offsets = [0, 7, 0], sizes = [2, 1, 256], strides = [1, 1, 1]} : vector<2x8x768xf32> to vector<2x1x256xf32>
    %cst_136 = arith.constant 1.250000e-01 : f32
    %214 = vector.broadcast %cst_136 : f32 to vector<2x1x256xf32>
    %215 = arith.mulf %213, %214 : vector<2x1x256xf32>
    %216 = vector.extract_strided_slice %212 {offsets = [0, 0, 256], sizes = [2, 8, 256], strides = [1, 1, 1]} : vector<2x8x768xf32> to vector<2x8x256xf32>
    %217 = vector.extract_strided_slice %212 {offsets = [0, 0, 512], sizes = [2, 8, 256], strides = [1, 1, 1]} : vector<2x8x768xf32> to vector<2x8x256xf32>
    %c0_137 = arith.constant 0 : index
    %c0_138 = arith.constant 0 : index
    %218 = vector.load %arg14[%c0_137, %c0_138] : memref<4x256xf32, #tpu.memory_space<vmem>>, vector<4x256xf32>
    %219 = vector.broadcast %215 : vector<2x1x256xf32> to vector<2x8x256xf32>
    %220 = arith.mulf %216, %219 : vector<2x8x256xf32>
    %221 = vector.shape_cast %220 : vector<2x8x256xf32> to vector<16x256xf32>
    %cst_139 = arith.constant dense<0.000000e+00> : vector<16x4xf32>
    %222 = tpu.matmul %221, %218, %cst_139 {dimension_numbers = #tpu.dot_dimension_numbers<[1], [1], [0], [0], [0, 0, 1, 0], [], []>} : vector<16x256xf32>, vector<4x256xf32>, vector<16x4xf32> -> vector<16x4xf32>
    %223 = vector.shape_cast %222 : vector<16x4xf32> to vector<2x8x4xf32>
    %cst_140 = arith.constant dense<0xFF800000> : vector<2x4xf32>
    %224 = vector.multi_reduction <maximumf>, %223, %cst_140 [1] : vector<2x8x4xf32> to vector<2x4xf32>
    %225 = vector.shape_cast %224 : vector<2x4xf32> to vector<2x1x4xf32>
    %226 = vector.broadcast %225 : vector<2x1x4xf32> to vector<2x8x4xf32>
    %227 = arith.subf %223, %226 : vector<2x8x4xf32>
    %228 = math.exp %227 : vector<2x8x4xf32>
    %cst_141 = arith.constant dense<0.000000e+00> : vector<2x4xf32>
    %229 = vector.multi_reduction <add>, %228, %cst_141 [1] : vector<2x8x4xf32> to vector<2x4xf32>
    %230 = vector.shape_cast %229 : vector<2x4xf32> to vector<2x1x4xf32>
    %231 = vector.broadcast %230 : vector<2x1x4xf32> to vector<2x8x4xf32>
    %232 = arith.divf %228, %231 : vector<2x8x4xf32>
    %233 = vector.shape_cast %232 : vector<2x8x4xf32> to vector<16x4xf32>
    %cst_142 = arith.constant dense<0.000000e+00> : vector<16x256xf32>
    %234 = tpu.matmul %233, %218, %cst_142 {dimension_numbers = #tpu.dot_dimension_numbers<[1], [0], [0], [1], [0, 0, 1, 1], [], []>} : vector<16x4xf32>, vector<4x256xf32>, vector<16x256xf32> -> vector<16x256xf32>
    %235 = vector.shape_cast %234 : vector<16x256xf32> to vector<2x8x256xf32>
    %236 = arith.mulf %235, %217 : vector<2x8x256xf32>
    %cst_143 = arith.constant dense<0.000000e+00> : vector<2x256xf32>
    %237 = vector.multi_reduction <add>, %236, %cst_143 [1] : vector<2x8x256xf32> to vector<2x256xf32>
    %238 = arith.truncf %237 : vector<2x256xf32> to vector<2x256xbf16>
    %c0_144 = arith.constant 0 : index
    %c0_145 = arith.constant 0 : index
    %239 = vector.load %arg17[%c0_144, %c0_145] : memref<256x256xbf16, #tpu.memory_space<vmem>>, vector<256x256xbf16>
    %cst_146 = arith.constant dense<0.000000e+00> : vector<2x256xf32>
    %240 = tpu.matmul %238, %239, %cst_146 {dimension_numbers = #tpu.dot_dimension_numbers<[1], [0], [0], [1], [0, 0, 1, 1], [], []>} : vector<2x256xbf16>, vector<256x256xbf16>, vector<2x256xf32> -> vector<2x256xf32>
    %c0_147 = arith.constant 0 : index
    %c0_148 = arith.constant 0 : index
    %241 = vector.load %arg18[%c0_147, %c0_148] : memref<1x256xf32, #tpu.memory_space<vmem>>, vector<1x256xf32>
    %242 = vector.broadcast %241 : vector<1x256xf32> to vector<2x256xf32>
    %243 = arith.addf %240, %242 : vector<2x256xf32>
    %244 = arith.truncf %243 : vector<2x256xf32> to vector<2x256xbf16>
    %c0_149 = arith.constant 0 : index
    %c0_150 = arith.constant 0 : index
    %245 = vector.load %arg19[%c0_149, %c0_150] : memref<256x128xbf16, #tpu.memory_space<vmem>>, vector<256x128xbf16>
    %cst_151 = arith.constant dense<0.000000e+00> : vector<2x128xf32>
    %246 = tpu.matmul %244, %245, %cst_151 {dimension_numbers = #tpu.dot_dimension_numbers<[1], [0], [0], [1], [0, 0, 1, 1], [], []>} : vector<2x256xbf16>, vector<256x128xbf16>, vector<2x128xf32> -> vector<2x128xf32>
    %c0_152 = arith.constant 0 : index
    %c0_153 = arith.constant 0 : index
    %247 = vector.load %arg20[%c0_152, %c0_153] : memref<1x128xf32, #tpu.memory_space<vmem>>, vector<1x128xf32>
    %248 = vector.broadcast %247 : vector<1x128xf32> to vector<2x128xf32>
    %249 = arith.addf %246, %248 : vector<2x128xf32>
    %cst_154 = arith.constant dense<0.000000e+00> : vector<2xf32>
    %250 = vector.multi_reduction <add>, %249, %cst_154 [1] : vector<2x128xf32> to vector<2xf32>
    %251 = vector.shape_cast %250 : vector<2xf32> to vector<2x1xf32>
    %cst_155 = arith.constant 1.280000e+02 : f32
    %252 = vector.broadcast %cst_155 : f32 to vector<2x1xf32>
    %253 = arith.divf %251, %252 : vector<2x1xf32>
    %254 = vector.broadcast %253 : vector<2x1xf32> to vector<2x128xf32>
    %255 = arith.subf %249, %254 : vector<2x128xf32>
    %256 = vector.broadcast %253 : vector<2x1xf32> to vector<2x128xf32>
    %257 = arith.subf %249, %256 : vector<2x128xf32>
    %258 = arith.mulf %255, %257 : vector<2x128xf32>
    %cst_156 = arith.constant dense<0.000000e+00> : vector<2xf32>
    %259 = vector.multi_reduction <add>, %258, %cst_156 [1] : vector<2x128xf32> to vector<2xf32>
    %260 = vector.shape_cast %259 : vector<2xf32> to vector<2x1xf32>
    %cst_157 = arith.constant 1.280000e+02 : f32
    %261 = vector.broadcast %cst_157 : f32 to vector<2x1xf32>
    %262 = arith.divf %260, %261 : vector<2x1xf32>
    %263 = vector.broadcast %253 : vector<2x1xf32> to vector<2x128xf32>
    %264 = arith.subf %249, %263 : vector<2x128xf32>
    %cst_158 = arith.constant 9.99999974E-6 : f32
    %265 = vector.broadcast %cst_158 : f32 to vector<2x1xf32>
    %266 = arith.addf %262, %265 : vector<2x1xf32>
    %267 = math.rsqrt %266 : vector<2x1xf32>
    %268 = vector.broadcast %267 : vector<2x1xf32> to vector<2x128xf32>
    %269 = arith.mulf %264, %268 : vector<2x128xf32>
    %c0_159 = arith.constant 0 : index
    %c0_160 = arith.constant 0 : index
    %270 = vector.load %arg21[%c0_159, %c0_160] : memref<1x128xf32, #tpu.memory_space<vmem>>, vector<1x128xf32>
    %271 = vector.broadcast %270 : vector<1x128xf32> to vector<2x128xf32>
    %272 = arith.mulf %269, %271 : vector<2x128xf32>
    %c0_161 = arith.constant 0 : index
    %c0_162 = arith.constant 0 : index
    %273 = vector.load %arg22[%c0_161, %c0_162] : memref<1x128xf32, #tpu.memory_space<vmem>>, vector<1x128xf32>
    %274 = vector.broadcast %273 : vector<1x128xf32> to vector<2x128xf32>
    %275 = arith.addf %272, %274 : vector<2x128xf32>
    %cst_163 = arith.constant 5.000000e-01 : f32
    %276 = vector.broadcast %cst_163 : f32 to vector<2x128xf32>
    %277 = arith.mulf %276, %275 : vector<2x128xf32>
    %cst_164 = arith.constant 0.707106769 : f32
    %278 = vector.broadcast %cst_164 : f32 to vector<2x128xf32>
    %279 = arith.mulf %275, %278 : vector<2x128xf32>
    %cst_165 = arith.constant 0.000000e+00 : f32
    %280 = vector.broadcast %cst_165 : f32 to vector<2x128xf32>
    %281 = arith.cmpf olt, %279, %280 : vector<2x128xf32>
    %cst_166 = arith.constant -1.000000e+00 : f32
    %cst_167 = arith.constant 1.000000e+00 : f32
    %282 = vector.broadcast %cst_166 : f32 to vector<2x128xf32>
    %283 = vector.broadcast %cst_167 : f32 to vector<2x128xf32>
    %284 = arith.select %281, %282, %283 : vector<2x128xi1>, vector<2x128xf32>
    %285 = math.absf %279 : vector<2x128xf32>
    %cst_168 = arith.constant 0.327591091 : f32
    %286 = vector.broadcast %cst_168 : f32 to vector<2x128xf32>
    %287 = arith.mulf %286, %285 : vector<2x128xf32>
    %cst_169 = arith.constant 1.000000e+00 : f32
    %288 = vector.broadcast %cst_169 : f32 to vector<2x128xf32>
    %289 = arith.addf %288, %287 : vector<2x128xf32>
    %cst_170 = arith.constant 1.000000e+00 : f32
    %290 = vector.broadcast %cst_170 : f32 to vector<2x128xf32>
    %291 = arith.divf %290, %289 : vector<2x128xf32>
    %cst_171 = arith.constant 1.06140542 : f32
    %292 = vector.broadcast %cst_171 : f32 to vector<2x128xf32>
    %293 = arith.mulf %292, %291 : vector<2x128xf32>
    %cst_172 = arith.constant -1.45315206 : f32
    %294 = vector.broadcast %cst_172 : f32 to vector<2x128xf32>
    %295 = arith.addf %293, %294 : vector<2x128xf32>
    %296 = arith.mulf %295, %291 : vector<2x128xf32>
    %cst_173 = arith.constant 1.42141378 : f32
    %297 = vector.broadcast %cst_173 : f32 to vector<2x128xf32>
    %298 = arith.addf %296, %297 : vector<2x128xf32>
    %299 = arith.mulf %298, %291 : vector<2x128xf32>
    %cst_174 = arith.constant -0.284496725 : f32
    %300 = vector.broadcast %cst_174 : f32 to vector<2x128xf32>
    %301 = arith.addf %299, %300 : vector<2x128xf32>
    %302 = arith.mulf %301, %291 : vector<2x128xf32>
    %cst_175 = arith.constant 0.254829586 : f32
    %303 = vector.broadcast %cst_175 : f32 to vector<2x128xf32>
    %304 = arith.addf %302, %303 : vector<2x128xf32>
    %305 = arith.mulf %304, %291 : vector<2x128xf32>
    %cst_176 = arith.constant 0.000000e+00 : f32
    %306 = vector.broadcast %cst_176 : f32 to vector<2x128xf32>
    %307 = arith.subf %306, %285 : vector<2x128xf32>
    %308 = arith.mulf %307, %285 : vector<2x128xf32>
    %309 = math.exp %308 : vector<2x128xf32>
    %310 = arith.mulf %305, %309 : vector<2x128xf32>
    %cst_177 = arith.constant 1.000000e+00 : f32
    %311 = vector.broadcast %cst_177 : f32 to vector<2x128xf32>
    %312 = arith.subf %311, %310 : vector<2x128xf32>
    %313 = arith.mulf %284, %312 : vector<2x128xf32>
    %cst_178 = arith.constant 1.000000e+00 : f32
    %314 = vector.broadcast %cst_178 : f32 to vector<2x128xf32>
    %315 = arith.addf %314, %313 : vector<2x128xf32>
    %316 = arith.mulf %277, %315 : vector<2x128xf32>
    %c0_179 = arith.constant 0 : index
    %c0_180 = arith.constant 0 : index
    %317 = vector.load %arg23[%c0_179, %c0_180] : memref<1x128xf32, #tpu.memory_space<vmem>>, vector<1x128xf32>
    %318 = vector.broadcast %317 : vector<1x128xf32> to vector<2x128xf32>
    %319 = arith.mulf %316, %318 : vector<2x128xf32>
    %cst_181 = arith.constant dense<0.000000e+00> : vector<2xf32>
    %320 = vector.multi_reduction <add>, %319, %cst_181 [1] : vector<2x128xf32> to vector<2xf32>
    %321 = vector.shape_cast %320 : vector<2xf32> to vector<2x1xf32>
    %c0_182 = arith.constant 0 : index
    %c0_183 = arith.constant 0 : index
    %322 = vector.load %arg24[%c0_182, %c0_183] : memref<1x1xf32, #tpu.memory_space<vmem>>, vector<1x1xf32>
    %323 = vector.broadcast %322 : vector<1x1xf32> to vector<2x1xf32>
    %324 = arith.addf %321, %323 : vector<2x1xf32>
    %cst_184 = arith.constant 0.000000e+00 : f32
    %325 = vector.broadcast %cst_184 : f32 to vector<2x1xf32>
    %326 = arith.subf %325, %324 : vector<2x1xf32>
    %327 = math.exp %326 : vector<2x1xf32>
    %cst_185 = arith.constant 1.000000e+00 : f32
    %328 = vector.broadcast %cst_185 : f32 to vector<2x1xf32>
    %329 = arith.addf %328, %327 : vector<2x1xf32>
    %cst_186 = arith.constant 1.000000e+00 : f32
    %330 = vector.broadcast %cst_186 : f32 to vector<2x1xf32>
    %331 = arith.divf %330, %329 : vector<2x1xf32>
    %c0_187 = arith.constant 0 : index
    %c0_188 = arith.constant 0 : index
    %332 = vector.load %arg25[%c0_187, %c0_188] : memref<2x1xf32, #tpu.memory_space<vmem>>, vector<2x1xf32>
    tpu.vector_store %arg25[%c0_187, %c0_188], %331 {strides = array<i32>} : memref<2x1xf32, #tpu.memory_space<vmem>>, vector<2x1xf32>,
    return
  }
}

</mosaic_0001>

<bundles_post_ra>
// kernel: forward.1
= control target key start
LH: loop header
LB: loop body
LE: loop exit
PB: predicated region body
PF: predicated region fallthrough
CT: control target
= control target key end

     0   :  { %s4697_s0 = inlined_call_operand.vmem [shape: f32[2,8,4], index: 0, kind: input, shape index: {}]   ;;  %s4698_s1 = inlined_call_operand.vmem [shape: bf16[3,4,64], index: 1, kind: input, shape index: {}]   ;;  %s4699_s2 = inlined_call_operand.vmem [shape: f32[1,64], index: 2, kind: input, shape index: {}]   ;;  %s4700_s3 = inlined_call_operand.vmem [shape: f32[1,64], index: 3, kind: input, shape index: {}]   ;;  %s4701_s4 = inlined_call_operand.vmem [shape: f32[1,64], index: 4, kind: input, shape index: {}]   ;;  %s4702_s5 = inlined_call_operand.hbm [shape: bf16[3,64,128], index: 5, kind: input, shape index: {}]   ;;  %s4703_s6 = inlined_call_operand.vmem [shape: f32[1,128], index: 6, kind: input, shape index: {}]   ;;  %s4704_s7 = inlined_call_operand.vmem [shape: f32[1,128], index: 7, kind: input, shape index: {}]   ;;  %s4705_s8 = inlined_call_operand.vmem [shape: f32[1,128], index: 8, kind: input, shape index: {}]   ;;  %s4706_s9 = inlined_call_operand.hbm [shape: bf16[3,128,256], index: 9, kind: input, shape index: {}]   ;;  %s4707_s10 = inlined_call_operand.vmem [shape: f32[1,256], index: 10, kind: input, shape index: {}]   ;;  %s4708_s11 = inlined_call_operand.vmem [shape: f32[1,256], index: 11, kind: input, shape index: {}]   ;;  %s4709_s12 = inlined_call_operand.vmem [shape: f32[1,256], index: 12, kind: input, shape index: {}]   ;;  %s4710_s13 = inlined_call_operand.hbm [shape: f32[3,2,16,16], index: 13, kind: input, shape index: {}]   ;;  %s4711_s14 = inlined_call_operand.vmem [shape: f32[4,256], index: 14, kind: input, shape index: {}]   ;;  %s4712_s15 = inlined_call_operand.hbm [shape: bf16[256,768], index: 15, kind: input, shape index: {}]   ;;  %s4713_s16 = inlined_call_operand.vmem [shape: f32[1,768], index: 16, kind: input, shape index: {}]   ;;  %s4714_s17 = inlined_call_operand.hbm [shape: bf16[256,256], index: 17, kind: input, shape index: {}]   ;;  %s4715_s18 = inlined_call_operand.vmem [shape: f32[1,256], index: 18, kind: input, shape index: {}]   ;;  %s4716_s19 = inlined_call_operand.hbm [shape: bf16[256,128], index: 19, kind: input, shape index: {}]   ;;  %s4717_s20 = inlined_call_operand.vmem [shape: f32[1,128], index: 20, kind: input, shape index: {}]   ;;  %s4718_s21 = inlined_call_operand.vmem [shape: f32[1,128], index: 21, kind: input, shape index: {}]   ;;  %s4719_s22 = inlined_call_operand.vmem [shape: f32[1,128], index: 22, kind: input, shape index: {}]   ;;  %s4720_s23 = inlined_call_operand.vmem [shape: f32[1,128], index: 23, kind: input, shape index: {}]   ;;  %s4721_s24 = inlined_call_operand.<no memory space> [shape: f32[1,1], index: 24, kind: input, shape index: {}]   ;;  %s4722_s25 = inlined_call_operand.vmem [shape: f32[2,1], index: 25, kind: output, shape index: {}]  }
   0x1   :  { %4731 = sst [smem:[#allocation17_spill]] %s4697_s0  ;;  %v30_v0 = vstv %s4721_s24 }
   0x2   :  { %4732 = sst [smem:[#allocation18_spill]] %s4698_s1  ;;  %31 = vst [vmem:[#allocation2] sm:$0x1] %v30_v0 }
   0x3   :  { %4733 = sst [smem:[#allocation19_spill]] %s4699_s2 }
   0x4   :  { %4734 = sst [smem:[#allocation20_spill]] %s4700_s3 }
   0x5   :  { %4735 = sst [smem:[#allocation21_spill]] %s4701_s4 }
   0x6   :  { %4736 = sst [smem:[#allocation22_spill]] %s4702_s5 }
   0x7   :  { %4737 = sst [smem:[#allocation23_spill]] %s4703_s6 }
   0x8   :  { %4738 = sst [smem:[#allocation24_spill]] %s4704_s7 }
   0x9   :  { %4739 = sst [smem:[#allocation25_spill]] %s4705_s8 }
   0xa   :  { %4740 = sst [smem:[#allocation26_spill]] %s4706_s9 }
   0xb   :  { %32 = vsyncpa [#allocation4], 0 }
   0xc   :  { %33 = vsyncpa [#allocation6], 0 }
   0xd   :  { %34 = vsyncpa [#allocation9], 0 }
   0xe   :  { %35 = vsyncpa [#allocation12], 0  ;;  %s4222_s6 = smov [#allocation5]   ;;  %s4741_s26 = sld [smem:[#allocation26_spill]] }
   0xf   :  { %s69_s30 = sshll.u32 %s4222_s6, 4  ;;  %s70_s30 = int_to_ptr.vmem [resolvable:$true] %s69_s30 }
  0x14   :  { %s4082_s1 = scalar_lea.hbm %s4741_s26, 6144 }
  0x15   :  { %p4083_p0 = scmp.ne.s32.totalorder %s4741_s26, %s4082_s1  ;;  %p4086_p1 = scmp.lt.u32.totalorder %s4082_s1, %s4741_s26 }
  0x17   :  { %p4088_p2 = pnand %p4086_p1, %p4083_p0 }
  0x19   :  { %4091 = shalt.err (!%p4088_p2)
}
  0x1a   :  { %s4092_s24 = scalar_lea.vmem %s70_s30, 6144  ;;  %p4097_p4 = scmp.lt.s32.totalorder %s70_s30, %s70_s30 }
  0x1b   :  { %p4093_p3 = scmp.ne.s32.totalorder %s70_s30, %s4092_s24  ;;  %p4098_p5 = scmp.lt.s32.totalorder %s4092_s24, %s4092_s24 }
  0x1d   :  { %p4099_p6 = por %p4098_p5, %p4097_p4 }
  0x1f   :  { %p4100_p7 = pnand %p4099_p6, %p4093_p3 }
  0x21   :  { %4103 = shalt.err (!%p4100_p7)
}
  0x22   :  { %s4727_s9 = smov 128   ;;  %s4729_s5 = smov 8  }
  0x23   :  { %75 = dma.hbm_to_vmem [thread:$0]  %s4741_s26, 6144, %s70_s30, [#allocation6], %s4727_s9, %s4727_s9, %s4729_s5  }
  0x24   :  { %s4225_s2 = smov [#allocation8]   ;;  %s4104_s1 = scalar_lea.hbm %s4712_s15, 12288 }
  0x25   :  { %s101_s6 = sshll.u32 %s4225_s2, 4  ;;  %p4105_p8 = scmp.ne.s32.totalorder %s4712_s15, %s4104_s1  ;;  %s102_s6 = int_to_ptr.vmem [resolvable:$true] %s101_s6 }
  0x26   :  { %p4108_p9 = scmp.lt.u32.totalorder %s4104_s1, %s4712_s15 }
  0x28   :  { %p4110_p10 = pnand %p4108_p9, %p4105_p8 }
  0x2a   :  { %4113 = shalt.err (!%p4110_p10)
}
  0x2b   :  { %s4114_s24 = scalar_lea.vmem %s102_s6, 12288  ;;  %p4119_p12 = scmp.lt.s32.totalorder %s102_s6, %s102_s6 }
  0x2c   :  { %p4115_p11 = scmp.ne.s32.totalorder %s102_s6, %s4114_s24  ;;  %p4120_p13 = scmp.lt.s32.totalorder %s4114_s24, %s4114_s24 }
  0x2e   :  { %p4121_p0 = por %p4120_p13, %p4119_p12 }
  0x30   :  { %p4122_p1 = pnand %p4121_p0, %p4115_p11 }
  0x32   :  { %4125 = shalt.err (!%p4122_p1)
}
  0x33   :  { %s4226_s30 = smov 384   ;;  %s4227_s26 = smov 24  }
  0x34   :  { %107 = dma.hbm_to_vmem [thread:$0]  %s4712_s15, 12288, %s102_s6, [#allocation9], %s4226_s30, %s4226_s30, %s4227_s26  }
  0x35   :  { %s4228_s2 = smov [#allocation3]   ;;  %s4742_s8 = sld [smem:[#allocation22_spill]] }
  0x36   :  { %s51_s7 = sshll.u32 %s4228_s2, 4  ;;  %s52_s7 = int_to_ptr.vmem [resolvable:$true] %s51_s7 }
  0x3b   :  { %s4126_s27 = scalar_lea.hbm %s4742_s8, 1536 }
  0x3c   :  { %p4127_p2 = scmp.ne.s32.totalorder %s4742_s8, %s4126_s27  ;;  %p4130_p3 = scmp.lt.u32.totalorder %s4126_s27, %s4742_s8 }
  0x3e   :  { %p4132_p4 = pnand %p4130_p3, %p4127_p2 }
  0x40   :  { %4135 = shalt.err (!%p4132_p4)
}
  0x41   :  { %s4136_s5 = scalar_lea.vmem %s52_s7, 1536  ;;  %p4141_p6 = scmp.lt.s32.totalorder %s52_s7, %s52_s7 }
  0x42   :  { %p4137_p5 = scmp.ne.s32.totalorder %s52_s7, %s4136_s5  ;;  %p4142_p7 = scmp.lt.s32.totalorder %s4136_s5, %s4136_s5 }
  0x44   :  { %p4143_p8 = por %p4142_p7, %p4141_p6 }
  0x46   :  { %p4144_p9 = pnand %p4143_p8, %p4137_p5 }
  0x48   :  { %4147 = shalt.err (!%p4144_p9)
}
  0x49   :  { %s4229_s15 = smov 64   ;;  %s4230_s6 = smov 4  }
  0x4a   :  { %57 = dma.hbm_to_vmem [thread:$0]  %s4742_s8, 1536, %s52_s7, [#allocation4], %s4229_s15, %s4229_s15, %s4230_s6  }
  0x4b   :  { %s4231_s9 = smov [#allocation7]   ;;  %s4232_s29 = smov [#allocation10]  }
  0x4c   :  { %s87_s0 = sshll.u32 %s4231_s9, 4  ;;  %s115_s2 = sshll.u32 %s4232_s29, 4  ;;  %s88_s0 = int_to_ptr.vmem [resolvable:$true] %s87_s0  ;;  %s116_s2 = int_to_ptr.vmem [resolvable:$true] %s115_s2 }
  0x4d   :  { %s4148_s5 = scalar_lea.hbm %s4710_s13, 1536 }
  0x4e   :  { %p4149_p10 = scmp.ne.s32.totalorder %s4710_s13, %s4148_s5  ;;  %p4152_p11 = scmp.lt.u32.totalorder %s4148_s5, %s4710_s13 }
  0x50   :  { %p4154_p12 = pnand %p4152_p11, %p4149_p10 }
  0x52   :  { %4157 = shalt.err (!%p4154_p12)
}
  0x53   :  { %s4158_s7 = scalar_lea.vmem %s88_s0, 1536  ;;  %p4163_p0 = scmp.lt.s32.totalorder %s88_s0, %s88_s0 }
  0x54   :  { %p4159_p13 = scmp.ne.s32.totalorder %s88_s0, %s4158_s7  ;;  %p4164_p1 = scmp.lt.s32.totalorder %s4158_s7, %s4158_s7 }
  0x56   :  { %p4165_p2 = por %p4164_p1, %p4163_p0 }
  0x58   :  { %p4166_p3 = pnand %p4165_p2, %p4159_p13 }
  0x5a   :  { %4169 = shalt.err (!%p4166_p3)
}
  0x5b   :  { %s4743_s8 = smov 8   ;;  %s4744_s30 = smov 128  }
  0x5c   :  { %93 = dma.hbm_to_vmem [thread:$0]  %s4710_s13, 1536, %s88_s0, [#allocation6], %s4744_s30, %s4744_s30, %s4743_s8  }
  0x5d   :  { %s4170_s1 = scalar_lea.hbm %s4714_s17, 4096 }
  0x5e   :  { %p4171_p4 = scmp.ne.s32.totalorder %s4714_s17, %s4170_s1  ;;  %p4174_p5 = scmp.lt.u32.totalorder %s4170_s1, %s4714_s17 }
  0x60   :  { %p4176_p6 = pnand %p4174_p5, %p4171_p4 }
  0x62   :  { %4179 = shalt.err (!%p4176_p6)
}
  0x63   :  { %s4180_s24 = scalar_lea.vmem %s116_s2, 4096  ;;  %p4185_p8 = scmp.lt.s32.totalorder %s116_s2, %s116_s2 }
  0x64   :  { %p4181_p7 = scmp.ne.s32.totalorder %s116_s2, %s4180_s24  ;;  %p4186_p9 = scmp.lt.s32.totalorder %s4180_s24, %s4180_s24 }
  0x66   :  { %p4187_p10 = por %p4186_p9, %p4185_p8 }
  0x68   :  { %p4188_p11 = pnand %p4187_p10, %p4181_p7 }
  0x6a   :  { %4191 = shalt.err (!%p4188_p11)
}
  0x6b   :  { %121 = dma.hbm_to_vmem [thread:$0]  %s4714_s17, 4096, %s116_s2, [#allocation9], %s4744_s30, %s4744_s30, %s4743_s8  }
  0x6c   :  { %s4233_s7 = smov [#allocation11]   ;;  %s4192_s3 = scalar_lea.hbm %s4716_s19, 2048 }
  0x6d   :  { %s129_s26 = sshll.u32 %s4233_s7, 4  ;;  %p4193_p12 = scmp.ne.s32.totalorder %s4716_s19, %s4192_s3  ;;  %s130_s26 = int_to_ptr.vmem [resolvable:$true] %s129_s26 }
  0x6e   :  { %p4196_p13 = scmp.lt.u32.totalorder %s4192_s3, %s4716_s19 }
  0x70   :  { %p4198_p0 = pnand %p4196_p13, %p4193_p12 }
  0x72   :  { %4201 = shalt.err (!%p4198_p0)
}
  0x73   :  { %s4202_s28 = scalar_lea.vmem %s130_s26, 2048  ;;  %p4207_p2 = scmp.lt.s32.totalorder %s130_s26, %s130_s26 }
  0x74   :  { %p4203_p1 = scmp.ne.s32.totalorder %s130_s26, %s4202_s28  ;;  %p4208_p3 = scmp.lt.s32.totalorder %s4202_s28, %s4202_s28 }
  0x76   :  { %p4209_p4 = por %p4208_p3, %p4207_p2 }
  0x78   :  { %p4210_p5 = pnand %p4209_p4, %p4203_p1 }
  0x7a   :  { %4213 = shalt.err (!%p4210_p5)
}
  0x7b   :  { %135 = dma.hbm_to_vmem [thread:$0]  %s4716_s19, 2048, %s130_s26, [#allocation12], %s4229_s15, %s4229_s15, %s4230_s6  }
  0x7c   :  { %4214 = dma.done.wait [#allocation4], 1536  }
  0x7d   :  { %4215 = vsyncadd [#allocation4], 4294965760 }
  0x7e   :  { %4216 = dma.done.wait [#allocation6], 7680  }
  0x7f   :  { %4217 = vsyncadd [#allocation6], 4294959616 }
  0x80   :  { %4218 = dma.done.wait [#allocation9], 16384  }
  0x81   :  { %4219 = vsyncadd [#allocation9], 4294950912 }
  0x82   :  { %4220 = dma.done.wait [#allocation12], 2048  }
  0x83   :  { %4221 = vsyncadd [#allocation12], 4294965248  ;;  %v4234_v1 = vmov 0.0   ;;  %vm4235_vm0 = vmmov 0   ;;  %vm173_vm1 = vcmask 1041408   ;;  %s4745_s6 = sld [smem:[#allocation18_spill]] }
  0x84   :  { %3617 = vmatprep.subr.bf16.mxu0 %v4234_v1  ;;  %3619 = vmatprep.mubr.msk.bf16.mxu0 %vm4235_vm0, %v4234_v1  ;;  %s4746_s24 = sld [smem:[#allocation17_spill]]  ;;  %vm169_vm2 = vcmask 31744   ;;  %v266_v9 = vld [vmem:[#allocation7] sm:$0xff]  ;;  %vm271_vm3 = vcmask 130048   ;;  %v269_v10 = vld [vmem:[#allocation7 + $0x10] sm:$0xff]  ;;  %v267_v22 = vld [vmem:[#allocation7 + $0x8] sm:$0xff] }
  0x85   :  { %3623 = vmatprep.subr.bf16.mxu1 %v4234_v1  ;;  %3625 = vmatprep.mubr.msk.bf16.mxu1 %vm4235_vm0, %v4234_v1  ;;  %v270_v24 = vld [vmem:[#allocation7 + $0x18] sm:$0xff]  ;;  %v3739_v25 = vld [vmem:[#allocation3 + $0x40] sm:$0xff]   ;;  %v3741_v27 = vld [vmem:[#allocation3 + $0x48] sm:$0xff]   ;;  %s4747_s5 = sld [smem:[#allocation19_spill]]  ;;  %s4748_s28 = sld [smem:[#allocation20_spill]]  ;;  %vm594_vm6 = vcmask 523264  }
  0x86   :  { %v3740_v26 = vld [vmem:[#allocation3] sm:$0xff]   ;;  %v3742_v28 = vld [vmem:[#allocation3 + $0x8] sm:$0xff]   ;;  %v3743_v29 = vld [vmem:[#allocation3 + $0x50] sm:$0xff]   ;;  %s4749_s19 = sld [smem:[#allocation21_spill]]  ;;  %s4750_s8 = sld [smem:[#allocation23_spill]]  ;;  %vm2676_vm13 = vcmask 1043456  }
  0x87   :  { %v3744_v30 = vld [vmem:[#allocation3 + $0x10] sm:$0xff]   ;;  %v3745_v31 = vld [vmem:[#allocation3 + $0x58] sm:$0xff]   ;;  %s4751_s13 = sld [smem:[#allocation24_spill]]  ;;  %s4752_s26 = sld [smem:[#allocation25_spill]]  ;;  %vm2842_vm14 = vcmask 1041409  }
  0x88   :  { %v3746_v32 = vld [vmem:[#allocation3 + $0x18] sm:$0xff]  }
  0x89   :  { %v168_v2 = vld [vmem:[%s4745_s6] sm:$0x3]  ;;  %v3321_v7 = vld [vmem:[%s4745_s6 + $0x4] sm:$0x3]  ;;  %v3320_v21 = vld [vmem:[%s4745_s6 + $0x2] sm:$0x3] }
  0x8a   :  { %v165_v3 = vld [vmem:[%s4746_s24] sm:$0xff]  ;;  %v166_v4 = vld [vmem:[%s4746_s24 + $0x8] sm:$0xff]  ;;  %v175_v5 = vsel %vm173_vm1, %v168_v2, 0  ;;  %v223_v8 = vsel %vm173_vm1, %v3321_v7, 0  ;;  %v354_v23 = vsel %vm173_vm1, %v3320_v21, 0 }
  0x8b   :  { %v167_v6 = vpack.c.bf16 %v166_v4, %v165_v3  ;;  %3618 = vmatpush3.bf16.msra.mxu0 %v175_v5  ;;  %3624 = vmatpush3.bf16.msra.mxu1 %v223_v8  ;;  %v3328_v41 = vld [vmem:[%s4747_s5] ss:$0 sm:$0xff] }
  0x8c   :  { %v3329_v45 = vld [vmem:[%s4748_s28] ss:$0 sm:$0xff] }
  0x8d   :  { %v3330_v48 = vld [vmem:[%s4749_s19] ss:$0 sm:$0xff] }
  0x8e   :  { %3620 = vmatmul.mubr.msk.bf16.vlgmr.msra.gmra.mrb[0].mxu0 %vm169_vm2, %v167_v6  ;;  %3626 = vmatmul.mubr.msk.bf16.vlgmr.msra.gmra.mrb[0].mxu1 %vm169_vm2, %v167_v6 }
  0x8f   :  { %3633 = vmatprep.mubr.msk.f32.mxu1 %vm271_vm3, %v266_v9  ;;  %3646 = vmatprep.mubr.msk.f32.mxu0 %vm271_vm3, %v269_v10 }
 0x161   :  { %v211_v11 = vpop.f32.mrb[0].mxu0  ;;  %v259_v13 = vpop.f32.mrb[0].mxu1 }
 0x162   :  { %v3621_v12 = vpop.f32.mrb[1].mxu0  ;;  %v3627_v15 = vpop.f32.mrb[1].mxu1 }
 0x163   :  { %v214_v14 = vpop.f32.mrb[2].mxu0  ;;  %v262_v18 = vpop.f32.mrb[2].mxu1 }
 0x164   :  { %v3699_v16 = vpack.c.bf16 %v214_v14, %v211_v11  ;;  %v3622_v17 = vpop.f32.mrb[3].mxu0  ;;  %v3703_v19 = vpack.c.bf16 %v262_v18, %v259_v13  ;;  %v3628_v20 = vpop.f32.mrb[3].mxu1 }
 0x166   :  { %3700 = vmatprep.subr.bf16.mxu1 %v3699_v16  ;;  %3704 = vmatprep.subr.bf16.mxu0 %v3703_v19 }
 0x167   :  { %3702 = vmatpush3.bf16.msra.mxu1 %v3699_v16  ;;  %3706 = vmatpush3.bf16.msra.mxu0 %v3703_v19 }
 0x168   :  { %3636 = vmatprep.subr.bf16.mxu1 %v4234_v1  ;;  %3661 = vmatprep.subr.bf16.mxu0 %v4234_v1 }
 0x16a   :  { %3634 = vmatmul.mubr.msk.f32.vlgmr.msra.gmra.mrb[4].mxu1 %vm271_vm3, %v267_v22  ;;  %3647 = vmatmul.mubr.msk.f32.vlgmr.msra.gmra.mrb[4].mxu0 %vm271_vm3, %v270_v24 }
 0x16b   :  { %3637 = vmatpush3.bf16.msra.mxu1 %v354_v23  ;;  %3638 = vmatprep.mubr.msk.bf16.mxu1 %vm4235_vm0, %v4234_v1 }
 0x16c   :  { %3649 = vmatprep.subr.bf16.mxu1 %v4234_v1  ;;  %3669 = vmatprep.mubr.msk.bf16.mxu0 %vm4235_vm0, %v4234_v1 }
 0x16d   :  { %3662 = vmatpush3.bf16.msra.mxu0 %v3739_v25 }
 0x16e   :  { %3639 = vmatmul.mubr.msk.bf16.vlgmr.msra.gmra.mrb[8].mxu1 %vm169_vm2, %v167_v6  ;;  %3663 = vmatprep.subr.bf16.mxu0 %v4234_v1 }
 0x16f   :  { %3657 = vmatprep.mubr.msk.bf16.mxu1 %vm4235_vm0, %v4234_v1  ;;  %3650 = vmatpush3.bf16.msra.mxu1 %v3740_v26 }
 0x170   :  { %3651 = vmatprep.subr.bf16.mxu1 %v4234_v1 }
 0x171   :  { %3664 = vmatpush3.bf16.msra.mxu0 %v3741_v27 }
 0x172   :  { %3665 = vmatprep.subr.bf16.mxu0 %v4234_v1 }
 0x173   :  { %3652 = vmatpush3.bf16.msra.mxu1 %v3742_v28 }
 0x174   :  { %3653 = vmatprep.subr.bf16.mxu1 %v4234_v1 }
 0x175   :  { %3666 = vmatpush3.bf16.msra.mxu0 %v3743_v29 }
 0x176   :  { %3667 = vmatprep.subr.bf16.mxu0 %v4234_v1 }
 0x177   :  { %3654 = vmatpush3.bf16.msra.mxu1 %v3744_v30  ;;  %v4236_v30 = vmov 1.0  }
 0x178   :  { %3655 = vmatprep.subr.bf16.mxu1 %v4234_v1 }
 0x179   :  { %3668 = vmatpush3.bf16.msra.mxu0 %v3745_v31 }
 0x17a   :  { %3680 = vmatprep.subr.bf16.mxu0 %v4234_v1 }
 0x17b   :  { %3656 = vmatpush3.bf16.msra.mxu1 %v3746_v32 }
 0x23d   :  { %v3635_v33 = vpop.f32.mrb[4].mxu1  ;;  %v3648_v35 = vpop.f32.mrb[4].mxu0 }
 0x23e   :  { %v344_v34 = vpop.f32.mrb[5].mxu1  ;;  %v469_v36 = vpop.f32.mrb[5].mxu0 }
 0x241   :  { %v390_v37 = vpop.f32.mrb[8].mxu1 }
 0x242   :  { %v391_v38 = vadd.f32 %v390_v37, %v344_v34  ;;  %v3640_v39 = vpop.f32.mrb[9].mxu1 }
 0x243   :  { %v393_v40 = vpop.f32.mrb[10].mxu1 }
 0x244   :  { %v394_v42 = vadd.f32 %v3635_v33, %v393_v40  ;;  %v478_v43 = vadd.f32 %v469_v36, %v391_v38  ;;  %v3641_v44 = vpop.f32.mrb[11].mxu1 }
 0x245   :  { %v3748_v44 = vld [vmem:[#allocation3 + $0x28] sm:$0xff]  }
 0x246   :  { %v479_v46 = vadd.f32 %v3648_v35, %v394_v42  ;;  %v487_v47 = vadd.f32 %v3328_v41, %v478_v43  ;;  %v3747_v42 = vld [vmem:[#allocation3 + $0x20] sm:$0xff]  }
 0x248   :  { %v488_v49 = vadd.f32 %v3328_v41, %v479_v46  ;;  %v496_v50 = vmul.f32 %v3329_v45, %v487_v47  ;;  %v3750_v46 = vld [vmem:[#allocation3 + $0x38] sm:$0xff]   ;;  %v723_v47 = vld [vmem:[#allocation7 + $0x20] sm:$0xff] }
 0x24a   :  { %v497_v51 = vmul.f32 %v3329_v45, %v488_v49  ;;  %v505_v52 = vadd.f32 %v3330_v48, %v496_v50  ;;  %v3749_v45 = vld [vmem:[#allocation3 + $0x30] sm:$0xff]  }
 0x24c   :  { %v506_v53 = vadd.f32 %v3330_v48, %v497_v51  ;;  %v509_v54 = vmul.f32 0.70710677, %v505_v52  ;;  %v507_v37 = vmul.f32 0.5, %v505_v52 }
 0x24e   :  { %v510_v55 = vmul.f32 0.70710677, %v506_v53  ;;  %v515_v56 = vand.u32 2147483647, %v509_v54  ;;  %vm511_vm4 = vcmp.lt.f32.partialorder %v509_v54, 0.0  ;;  %v508_v38 = vmul.f32 0.5, %v506_v53 }
 0x24f   :  { %v513_v31 = vsel %vm511_vm4, -1.0, %v4236_v30 }
 0x250   :  { %v516_v57 = vand.u32 2147483647, %v510_v55  ;;  %v517_v58 = vmul.f32 0.3275911, %v515_v56  ;;  %v543_v62 = vsub.f32 0.0, %v515_v56  ;;  %vm512_vm5 = vcmp.lt.f32.partialorder %v510_v55, 0.0 }
 0x251   :  { %v514_v34 = vsel %vm512_vm5, -1.0, %v4236_v30 }
 0x252   :  { %v518_v59 = vmul.f32 0.3275911, %v516_v57  ;;  %v519_v60 = vadd.f32 1.0, %v517_v58  ;;  %v544_v63 = vsub.f32 0.0, %v516_v57  ;;  %v545_v2 = vmul.f32 %v543_v62, %v515_v56  ;;  %v724_v58 = vld [vmem:[#allocation7 + $0x28] sm:$0xff] }
 0x254   :  { %v520_v61 = vadd.f32 1.0, %v518_v59  ;;  %4032 = vrcp.f32 %v519_v60  ;;  %v546_v5 = vmul.f32 %v544_v63, %v516_v57  ;;  %v547_v8 = vmul.f32 1.442695, %v545_v2  ;;  %v726_v59 = vld [vmem:[#allocation7 + $0x30] sm:$0xff]  ;;  %v727_v60 = vld [vmem:[#allocation7 + $0x38] sm:$0xff] }
 0x255   :  { %v3751_v2 = vld [vmem:[#allocation5 + $0x100] ss:$8 sps:$4 sm:$0xff]  }
 0x256   :  { %4034 = vrcp.f32 %v520_v61  ;;  %v549_v11 = vmul.f32 1.442695, %v546_v5  ;;  %v3756_v5 = vld [vmem:[#allocation5 + $0x4] ss:$8 sps:$4 sm:$0xff]  }
 0x257   :  { %4036 = vpow2.f32 %v547_v8  ;;  %v3757_v8 = vld [vmem:[#allocation5 + $0x110] ss:$8 sps:$4 sm:$0xff]  }
 0x258   :  { %4038 = vpow2.f32 %v549_v11  ;;  %v3768_v11 = vld [vmem:[#allocation5 + $0x24] ss:$8 sps:$4 sm:$0xff]  }
 0x25e   :  { %v4033_v0 = vpop.eup %4032 }
 0x25f   :  { %v525_v3 = vmul.f32 1.0614054, %v4033_v0 }
 0x260   :  { %v4035_v4 = vpop.eup %4034 }
 0x261   :  { %v526_v6 = vmul.f32 1.0614054, %v4035_v4  ;;  %v527_v7 = vadd.f32 -1.4531521, %v525_v3  ;;  %v4037_v24 = vpop.eup %4036  ;;  %v3753_v3 = vld [vmem:[#allocation5 + $0x104] ss:$8 sps:$4 sm:$0xff]  }
 0x262   :  { %v4039_v27 = vpop.eup %4038 }
 0x263   :  { %v528_v9 = vadd.f32 -1.4531521, %v526_v6  ;;  %v529_v10 = vmul.f32 %v4033_v0, %v527_v7  ;;  %v3759_v6 = vld [vmem:[#allocation5 + $0x114] ss:$8 sps:$4 sm:$0xff]  }
 0x264   :  { %v3762_v7 = vld [vmem:[#allocation5 + $0x14] ss:$8 sps:$4 sm:$0xff]  }
 0x265   :  { %v530_v12 = vmul.f32 %v4035_v4, %v528_v9  ;;  %v531_v13 = vadd.f32 1.4214138, %v529_v10  ;;  %v3760_v9 = vld [vmem:[#allocation5 + $0x10] ss:$8 sps:$4 sm:$0xff]   ;;  %v3765_v10 = vld [vmem:[#allocation5 + $0x124] ss:$8 sps:$4 sm:$0xff]  }
 0x267   :  { %v532_v14 = vadd.f32 1.4214138, %v530_v12  ;;  %v533_v15 = vmul.f32 %v4033_v0, %v531_v13  ;;  %v3763_v12 = vld [vmem:[#allocation5 + $0x120] ss:$8 sps:$4 sm:$0xff]  }
 0x268   :  { %v3766_v13 = vld [vmem:[#allocation5 + $0x20] ss:$8 sps:$4 sm:$0xff]  }
 0x269   :  { %v534_v16 = vmul.f32 %v4035_v4, %v532_v14  ;;  %v535_v17 = vadd.f32 -0.28449672, %v533_v15  ;;  %v3771_v14 = vld [vmem:[#allocation5 + $0x134] ss:$8 sps:$4 sm:$0xff]  }
 0x26a   :  { %v3774_v15 = vld [vmem:[#allocation5 + $0x34] ss:$8 sps:$4 sm:$0xff]  }
 0x26b   :  { %v536_v18 = vadd.f32 -0.28449672, %v534_v16  ;;  %v537_v19 = vmul.f32 %v4033_v0, %v535_v17  ;;  %v3769_v16 = vld [vmem:[#allocation5 + $0x130] ss:$8 sps:$4 sm:$0xff]   ;;  %v4237_v17 = vmov 0  }
 0x26d   :  { %v538_v20 = vmul.f32 %v4035_v4, %v536_v18  ;;  %v539_v21 = vadd.f32 0.2548296, %v537_v19  ;;  %v3772_v18 = vld [vmem:[#allocation5 + $0x30] ss:$8 sps:$4 sm:$0xff]   ;;  %v3777_v19 = vld [vmem:[#allocation5 + $0x144] ss:$8 sps:$4 sm:$0xff]  }
 0x26f   :  { %v540_v22 = vadd.f32 0.2548296, %v538_v20  ;;  %v541_v23 = vmul.f32 %v4033_v0, %v539_v21  ;;  %v3780_v20 = vld [vmem:[#allocation5 + $0x44] ss:$8 sps:$4 sm:$0xff]   ;;  %v3775_v21 = vld [vmem:[#allocation5 + $0x140] ss:$8 sps:$4 sm:$0xff]  }
 0x271   :  { %v542_v25 = vmul.f32 %v4035_v4, %v540_v22  ;;  %v551_v26 = vmul.f32 %v4037_v24, %v541_v23  ;;  %v3754_v4 = vld [vmem:[#allocation5] ss:$8 sps:$4 sm:$0xff]   ;;  %v3783_v23 = vld [vmem:[#allocation5 + $0x154] ss:$8 sps:$4 sm:$0xff]  }
 0x272   :  { %v3778_v22 = vld [vmem:[#allocation5 + $0x40] ss:$8 sps:$4 sm:$0xff]   ;;  %v3786_v24 = vld [vmem:[#allocation5 + $0x54] ss:$8 sps:$4 sm:$0xff]  }
 0x273   :  { %v552_v28 = vmul.f32 %v4039_v27, %v542_v25  ;;  %v553_v29 = vsub.f32 1.0, %v551_v26  ;;  %v3781_v25 = vld [vmem:[#allocation5 + $0x150] ss:$8 sps:$4 sm:$0xff]   ;;  %v3789_v27 = vld [vmem:[#allocation5 + $0x164] ss:$8 sps:$4 sm:$0xff]  }
 0x274   :  { %v3784_v26 = vld [vmem:[#allocation5 + $0x50] ss:$8 sps:$4 sm:$0xff]  }
 0x275   :  { %v554_v32 = vsub.f32 1.0, %v552_v28  ;;  %v555_v33 = vmul.f32 %v553_v29, %v513_v31  ;;  %v3792_v28 = vld [vmem:[#allocation5 + $0x64] ss:$8 sps:$4 sm:$0xff]   ;;  %v3787_v29 = vld [vmem:[#allocation5 + $0x160] ss:$8 sps:$4 sm:$0xff]  }
 0x276   :  { %v3790_v31 = vld [vmem:[#allocation5 + $0x60] ss:$8 sps:$4 sm:$0xff]  }
 0x277   :  { %v556_v35 = vmul.f32 %v554_v32, %v514_v34  ;;  %v557_v36 = vadd.f32 1.0, %v555_v33  ;;  %v3795_v32 = vld [vmem:[#allocation5 + $0x174] ss:$8 sps:$4 sm:$0xff]   ;;  %v3793_v34 = vld [vmem:[#allocation5 + $0x170] ss:$8 sps:$4 sm:$0xff]  }
 0x278   :  { %v3798_v33 = vld [vmem:[#allocation5 + $0x74] ss:$8 sps:$4 sm:$0xff]  }
 0x279   :  { %v558_v39 = vadd.f32 1.0, %v556_v35  ;;  %v559_v40 = vmul.f32 %v557_v36, %v507_v37  ;;  %v3796_v35 = vld [vmem:[#allocation5 + $0x70] ss:$8 sps:$4 sm:$0xff]   ;;  %v3801_v36 = vld [vmem:[#allocation5 + $0x84] ss:$8 sps:$4 sm:$0xff]  }
 0x27b   :  { %v560_v41 = vmul.f32 %v558_v39, %v508_v38 }
 0x27d   :  { %v561_v43 = vpack.c.bf16 %v560_v41, %v559_v40 }
 0x27f   :  { %3658 = vmatmul.mubr.msk.bf16.vlgmr.msra.gmra.mrb[12].mxu1 %vm594_vm6, %v561_v43  ;;  %3670 = vmatmul.mubr.msk.bf16.vlgmr.msra.gmra.mrb[8].mxu0 %vm594_vm6, %v561_v43 }
 0x280   :  { %3681 = vmatpush3.bf16.msra.mxu0 %v3747_v42  ;;  %3688 = vmatprep.mubr.msk.bf16.mxu0 %vm4235_vm0, %v4234_v1  ;;  %v3350_v42 = vld [vmem:[%s4750_s8] ss:$0 sm:$0xff]  ;;  %vm3309_vm0 = vcmask 1024  }
 0x281   :  { %3682 = vmatprep.subr.bf16.mxu0 %v4234_v1  ;;  %3677 = vmatprep.mubr.msk.f32.mxu1 %vm271_vm3, %v723_v47 }
 0x284   :  { %3683 = vmatpush3.bf16.msra.mxu0 %v3748_v44 }
 0x285   :  { %3684 = vmatprep.subr.bf16.mxu0 %v4234_v1 }
 0x288   :  { %3685 = vmatpush3.bf16.msra.mxu0 %v3749_v45  ;;  %v3351_v45 = vld [vmem:[%s4751_s13] ss:$0 sm:$0xff] }
 0x289   :  { %3686 = vmatprep.subr.bf16.mxu0 %v4234_v1 }
 0x28c   :  { %3687 = vmatpush3.bf16.msra.mxu0 %v3750_v46 }
 0x28d   :  { %1292 = vmatprep.subr.bf16.mxu0 %v3753_v3 }
 0x28f   :  { %3689 = vmatmul.mubr.msk.bf16.vlgmr.msra.gmra.mrb[12].mxu0 %vm594_vm6, %v561_v43 }
 0x290   :  { %1293 = vmatpush1.bf16.msra.mxu0 %v3751_v2  ;;  %1324 = vmatprep.mubr.bf16.mxu0 %v4237_v17 }
 0x291   :  { %1294 = vmatprep.subr.bf16.mxu0 %v3759_v6 }
 0x294   :  { %1295 = vmatpush1.bf16.msra.mxu0 %v3757_v8 }
 0x295   :  { %1296 = vmatprep.subr.bf16.mxu0 %v3765_v10 }
 0x298   :  { %1297 = vmatpush1.bf16.msra.mxu0 %v3763_v12 }
 0x299   :  { %1298 = vmatprep.subr.bf16.mxu0 %v3771_v14 }
 0x29c   :  { %1299 = vmatpush1.bf16.msra.mxu0 %v3769_v16 }
 0x29d   :  { %1300 = vmatprep.subr.bf16.mxu0 %v3777_v19 }
 0x2a0   :  { %1301 = vmatpush1.bf16.msra.mxu0 %v3775_v21 }
 0x2a1   :  { %1302 = vmatprep.subr.bf16.mxu0 %v3783_v23 }
 0x2a4   :  { %1303 = vmatpush1.bf16.msra.mxu0 %v3781_v25 }
 0x2a5   :  { %1304 = vmatprep.subr.bf16.mxu0 %v3789_v27 }
 0x2a8   :  { %1305 = vmatpush1.bf16.msra.mxu0 %v3787_v29 }
 0x2a9   :  { %1306 = vmatprep.subr.bf16.mxu0 %v3795_v32 }
 0x2ac   :  { %1307 = vmatpush1.bf16.msra.mxu0 %v3793_v34 }
 0x2ad   :  { %1504 = vmatprep.subr.bf16.mxu0 %v3801_v36 }
 0x352   :  { %v632_v48 = vpop.f32.mrb[12].mxu1  ;;  %v715_v49 = vpop.f32.mrb[8].mxu0 }
 0x353   :  { %v3659_v50 = vpop.f32.mrb[13].mxu1  ;;  %v3671_v51 = vpop.f32.mrb[9].mxu0 }
 0x354   :  { %v635_v52 = vpop.f32.mrb[14].mxu1  ;;  %v718_v53 = vpop.f32.mrb[10].mxu0 }
 0x355   :  { %v3707_v54 = vpack.c.bf16 %v635_v52, %v632_v48  ;;  %v3711_v55 = vpack.c.bf16 %v718_v53, %v715_v49  ;;  %v3660_v56 = vpop.f32.mrb[15].mxu1  ;;  %v3672_v57 = vpop.f32.mrb[11].mxu0  ;;  %v3352_v48 = vld [vmem:[%s4752_s26] ss:$0 sm:$0xff] }
 0x357   :  { %3708 = vmatprep.subr.bf16.mxu1 %v3707_v54 }
 0x358   :  { %3710 = vmatpush3.bf16.msra.mxu1 %v3707_v54 }
 0x359   :  { %3712 = vmatprep.subr.bf16.mxu1 %v3711_v55 }
 0x35b   :  { %3678 = vmatmul.mubr.msk.f32.vlgmr.msra.gmra.mrb[6].mxu1 %vm271_vm3, %v724_v58 }
 0x35c   :  { %3714 = vmatpush3.bf16.msra.mxu1 %v3711_v55  ;;  %3696 = vmatprep.mubr.msk.f32.mxu1 %vm271_vm3, %v726_v59 }
 0x35d   :  { %1135 = vmatprep.subr.bf16.mxu1 %v3756_v5 }
 0x35f   :  { %3697 = vmatmul.mubr.msk.f32.vlgmr.msra.gmra.mrb[16].mxu1 %vm271_vm3, %v727_v60 }
 0x360   :  { %1136 = vmatpush1.bf16.msra.mxu1 %v3754_v4  ;;  %1167 = vmatprep.mubr.bf16.mxu1 %v4237_v17 }
 0x361   :  { %1137 = vmatprep.subr.bf16.mxu1 %v3762_v7 }
 0x362   :  { %v4528_v61 = vpop.f32.mrb[12].mxu0 }
 0x363   :  { %v3690_v62 = vpop.f32.mrb[13].mxu0 }
 0x364   :  { %v4530_v63 = vpop.f32.mrb[14].mxu0  ;;  %1138 = vmatpush1.bf16.msra.mxu1 %v3760_v9 }
 0x365   :  { %v3691_v0 = vpop.f32.mrb[15].mxu0  ;;  %1139 = vmatprep.subr.bf16.mxu1 %v3768_v11 }
 0x368   :  { %1140 = vmatpush1.bf16.msra.mxu1 %v3766_v13 }
 0x369   :  { %1141 = vmatprep.subr.bf16.mxu1 %v3774_v15 }
 0x36c   :  { %1142 = vmatpush1.bf16.msra.mxu1 %v3772_v18 }
 0x36d   :  { %1143 = vmatprep.subr.bf16.mxu1 %v3780_v20 }
 0x370   :  { %1144 = vmatpush1.bf16.msra.mxu1 %v3778_v22 }
 0x371   :  { %1145 = vmatprep.subr.bf16.mxu1 %v3786_v24 }
 0x374   :  { %1146 = vmatpush1.bf16.msra.mxu1 %v3784_v26 }
 0x375   :  { %1147 = vmatprep.subr.bf16.mxu1 %v3792_v28 }
 0x378   :  { %1148 = vmatpush1.bf16.msra.mxu1 %v3790_v31 }
 0x379   :  { %1149 = vmatprep.subr.bf16.mxu1 %v3798_v33 }
 0x37c   :  { %1150 = vmatpush1.bf16.msra.mxu1 %v3796_v35 }
 0x42e   :  { %v3679_v37 = vpop.f32.mrb[6].mxu1 }
 0x42f   :  { %v871_v38 = vadd.f32 %v3679_v37, %v4530_v63  ;;  %v800_v39 = vpop.f32.mrb[7].mxu1 }
 0x430   :  { %v868_v40 = vadd.f32 %v4528_v61, %v800_v39 }
 0x432   :  { %v3698_v41 = vpop.f32.mrb[16].mxu1 }
 0x433   :  { %v956_v43 = vadd.f32 %v3698_v41, %v871_v38  ;;  %v946_v44 = vpop.f32.mrb[17].mxu1 }
 0x434   :  { %v955_v46 = vadd.f32 %v946_v44, %v868_v40 }
 0x435   :  { %v965_v47 = vadd.f32 %v3350_v42, %v956_v43  ;;  %v3799_v43 = vld [vmem:[#allocation5 + $0x80] ss:$8 sps:$4 sm:$0xff]  }
 0x436   :  { %v964_v49 = vadd.f32 %v3350_v42, %v955_v46  ;;  %v3802_v46 = vld [vmem:[#allocation5 + $0x90] ss:$8 sps:$4 sm:$0xff]  }
 0x437   :  { %v974_v50 = vmul.f32 %v3351_v45, %v965_v47  ;;  %v3807_v47 = vld [vmem:[#allocation5 + $0xa4] ss:$8 sps:$4 sm:$0xff]  }
 0x438   :  { %v973_v51 = vmul.f32 %v3351_v45, %v964_v49  ;;  %v3804_v45 = vld [vmem:[#allocation5 + $0x94] ss:$8 sps:$4 sm:$0xff]  }
 0x439   :  { %v983_v52 = vadd.f32 %v3352_v48, %v974_v50  ;;  %v3810_v49 = vld [vmem:[#allocation5 + $0xb4] ss:$8 sps:$4 sm:$0xff]   ;;  %v3808_v50 = vld [vmem:[#allocation5 + $0xb0] ss:$8 sps:$4 sm:$0xff]  }
 0x43a   :  { %v982_v53 = vadd.f32 %v3352_v48, %v973_v51  ;;  %v3805_v48 = vld [vmem:[#allocation5 + $0xa0] ss:$8 sps:$4 sm:$0xff]   ;;  %v3813_v51 = vld [vmem:[#allocation5 + $0xc4] ss:$8 sps:$4 sm:$0xff]  }
 0x43b   :  { %v987_v54 = vmul.f32 0.70710677, %v983_v52  ;;  %v985_v37 = vmul.f32 0.5, %v983_v52  ;;  %v3811_v52 = vld [vmem:[#allocation5 + $0xc0] ss:$8 sps:$4 sm:$0xff]  }
 0x43c   :  { %v986_v55 = vmul.f32 0.70710677, %v982_v53  ;;  %v984_v39 = vmul.f32 0.5, %v982_v53  ;;  %v3816_v53 = vld [vmem:[#allocation5 + $0xd4] ss:$8 sps:$4 sm:$0xff]  }
 0x43d   :  { %v993_v56 = vand.u32 2147483647, %v987_v54  ;;  %vm989_vm7 = vcmp.lt.f32.partialorder %v987_v54, 0.0  ;;  %v3814_v54 = vld [vmem:[#allocation5 + $0xd0] ss:$8 sps:$4 sm:$0xff]  }
 0x43e   :  { %v992_v57 = vand.u32 2147483647, %v986_v55  ;;  %vm988_vm8 = vcmp.lt.f32.partialorder %v986_v55, 0.0  ;;  %v991_v32 = vsel %vm989_vm7, -1.0, %v4236_v30  ;;  %v3817_v55 = vld [vmem:[#allocation5 + $0xe0] ss:$8 sps:$4 sm:$0xff]  }
 0x43f   :  { %v995_v58 = vmul.f32 0.3275911, %v993_v56  ;;  %v1021_v62 = vsub.f32 0.0, %v993_v56  ;;  %v990_v34 = vsel %vm988_vm8, -1.0, %v4236_v30 }
 0x440   :  { %v994_v59 = vmul.f32 0.3275911, %v992_v57  ;;  %v1020_v63 = vsub.f32 0.0, %v992_v57 }
 0x441   :  { %v997_v60 = vadd.f32 1.0, %v995_v58  ;;  %v1023_v2 = vmul.f32 %v1021_v62, %v993_v56  ;;  %v3822_v56 = vld [vmem:[#allocation5 + $0xf4] ss:$8 sps:$4 sm:$0xff]  }
 0x442   :  { %v996_v61 = vadd.f32 1.0, %v994_v59  ;;  %v1022_v4 = vmul.f32 %v1020_v63, %v992_v57  ;;  %v3820_v57 = vld [vmem:[#allocation5 + $0xf0] ss:$8 sps:$4 sm:$0xff]  }
 0x443   :  { %4040 = vrcp.f32 %v997_v60  ;;  %v1026_v8 = vmul.f32 1.442695, %v1023_v2 }
 0x444   :  { %4042 = vrcp.f32 %v996_v61  ;;  %v1024_v10 = vmul.f32 1.442695, %v1022_v4 }
 0x445   :  { %4044 = vpow2.f32 %v1026_v8  ;;  %v1337_v8 = vld [vmem:[#allocation7 + $0x48] sm:$0xff] }
 0x446   :  { %4046 = vpow2.f32 %v1024_v10  ;;  %v1340_v10 = vld [vmem:[#allocation7 + $0x58] sm:$0xff] }
 0x44d   :  { %v4041_v0 = vpop.eup %4040 }
 0x44e   :  { %v4043_v3 = vpop.eup %4042  ;;  %v1003_v5 = vmul.f32 1.0614054, %v4041_v0 }
 0x44f   :  { %v1002_v6 = vmul.f32 1.0614054, %v4043_v3  ;;  %v4045_v25 = vpop.eup %4044 }
 0x450   :  { %v1005_v7 = vadd.f32 -1.4531521, %v1003_v5  ;;  %v4047_v27 = vpop.eup %4046 }
 0x451   :  { %v1004_v9 = vadd.f32 -1.4531521, %v1002_v6 }
 0x452   :  { %v1007_v11 = vmul.f32 %v4041_v0, %v1005_v7  ;;  %v1336_v7 = vld [vmem:[#allocation7 + $0x40] sm:$0xff] }
 0x453   :  { %v1006_v12 = vmul.f32 %v4043_v3, %v1004_v9  ;;  %v1339_v9 = vld [vmem:[#allocation7 + $0x50] sm:$0xff] }
 0x454   :  { %v1009_v13 = vadd.f32 1.4214138, %v1007_v11 }
 0x455   :  { %v1008_v14 = vadd.f32 1.4214138, %v1006_v12 }
 0x456   :  { %v1011_v15 = vmul.f32 %v4041_v0, %v1009_v13 }
 0x457   :  { %v1010_v16 = vmul.f32 %v4043_v3, %v1008_v14 }
 0x458   :  { %v1013_v18 = vadd.f32 -0.28449672, %v1011_v15  ;;  %v3823_v15 = vld [vmem:[#allocation8] ss:$24 sps:$4 sm:$0xff]  }
 0x459   :  { %v1012_v19 = vadd.f32 -0.28449672, %v1010_v16  ;;  %v3825_v16 = vld [vmem:[#allocation8 + $0x4] ss:$24 sps:$4 sm:$0xff]  }
 0x45a   :  { %v1015_v20 = vmul.f32 %v4041_v0, %v1013_v18  ;;  %v3828_v18 = vld [vmem:[#allocation8 + $0xc] ss:$24 sps:$4 sm:$0xff]  }
 0x45b   :  { %v1014_v21 = vmul.f32 %v4043_v3, %v1012_v19  ;;  %v3826_v19 = vld [vmem:[#allocation8 + $0x8] ss:$24 sps:$4 sm:$0xff]  }
 0x45c   :  { %v1017_v22 = vadd.f32 0.2548296, %v1015_v20  ;;  %v3831_v20 = vld [vmem:[#allocation8 + $0x34] ss:$24 sps:$4 sm:$0xff]  }
 0x45d   :  { %v1016_v23 = vadd.f32 0.2548296, %v1014_v21  ;;  %v3829_v21 = vld [vmem:[#allocation8 + $0x30] ss:$24 sps:$4 sm:$0xff]  }
 0x45e   :  { %v1019_v24 = vmul.f32 %v4041_v0, %v1017_v22  ;;  %v3834_v22 = vld [vmem:[#allocation8 + $0x3c] ss:$24 sps:$4 sm:$0xff]  }
 0x45f   :  { %v1018_v26 = vmul.f32 %v4043_v3, %v1016_v23  ;;  %v3832_v23 = vld [vmem:[#allocation8 + $0x38] ss:$24 sps:$4 sm:$0xff]  }
 0x460   :  { %v1029_v28 = vmul.f32 %v4045_v25, %v1019_v24  ;;  %v3837_v24 = vld [vmem:[#allocation8 + $0x64] ss:$24 sps:$4 sm:$0xff]   ;;  %v3835_v25 = vld [vmem:[#allocation8 + $0x60] ss:$24 sps:$4 sm:$0xff]  }
 0x461   :  { %v1028_v29 = vmul.f32 %v4047_v27, %v1018_v26  ;;  %v3840_v26 = vld [vmem:[#allocation8 + $0x6c] ss:$24 sps:$4 sm:$0xff]   ;;  %v3838_v27 = vld [vmem:[#allocation8 + $0x68] ss:$24 sps:$4 sm:$0xff]  }
 0x462   :  { %v1031_v31 = vsub.f32 1.0, %v1029_v28  ;;  %v3843_v28 = vld [vmem:[#allocation8 + $0x94] ss:$24 sps:$4 sm:$0xff]  }
 0x463   :  { %v1030_v33 = vsub.f32 1.0, %v1028_v29  ;;  %v3841_v29 = vld [vmem:[#allocation8 + $0x90] ss:$24 sps:$4 sm:$0xff]  }
 0x464   :  { %v1033_v35 = vmul.f32 %v1031_v31, %v991_v32  ;;  %v3846_v31 = vld [vmem:[#allocation8 + $0x9c] ss:$24 sps:$4 sm:$0xff]   ;;  %v3844_v32 = vld [vmem:[#allocation8 + $0x98] ss:$24 sps:$4 sm:$0xff]  }
 0x465   :  { %v1032_v36 = vmul.f32 %v1030_v33, %v990_v34  ;;  %v3849_v33 = vld [vmem:[#allocation8 + $0xc4] ss:$24 sps:$4 sm:$0xff]   ;;  %v3847_v34 = vld [vmem:[#allocation8 + $0xc0] ss:$24 sps:$4 sm:$0xff]  }
 0x466   :  { %v1035_v38 = vadd.f32 1.0, %v1033_v35  ;;  %v3852_v35 = vld [vmem:[#allocation8 + $0xcc] ss:$24 sps:$4 sm:$0xff]  }
 0x467   :  { %v1034_v40 = vadd.f32 1.0, %v1032_v36  ;;  %v3850_v36 = vld [vmem:[#allocation8 + $0xc8] ss:$24 sps:$4 sm:$0xff]  }
 0x468   :  { %v1037_v41 = vmul.f32 %v1035_v38, %v985_v37  ;;  %v3855_v37 = vld [vmem:[#allocation8 + $0xf4] ss:$24 sps:$4 sm:$0xff]   ;;  %v3853_v38 = vld [vmem:[#allocation8 + $0xf0] ss:$24 sps:$4 sm:$0xff]  }
 0x469   :  { %v1036_v42 = vmul.f32 %v1034_v40, %v984_v39  ;;  %v3858_v39 = vld [vmem:[#allocation8 + $0xfc] ss:$24 sps:$4 sm:$0xff]   ;;  %v3856_v40 = vld [vmem:[#allocation8 + $0xf8] ss:$24 sps:$4 sm:$0xff]  }
 0x46b   :  { %v1038_v44 = vpack.c.bf16 %v1037_v41, %v1036_v42  ;;  %v3861_v41 = vld [vmem:[#allocation8 + $0x124] ss:$24 sps:$4 sm:$0xff]   ;;  %v3859_v42 = vld [vmem:[#allocation8 + $0x120] ss:$24 sps:$4 sm:$0xff]  }
 0x46d   :  { %1168 = vmatmul.mubr.bf16.vlgmr.msra.gmra.mrb[20].mxu1 %v1038_v44  ;;  %1325 = vmatmul.mubr.bf16.vlgmr.msra.gmra.mrb[16].mxu0 %v1038_v44 }
 0x46e   :  { %1505 = vmatpush1.bf16.msra.mxu0 %v3799_v43  ;;  %1536 = vmatprep.mubr.bf16.mxu0 %v4237_v17  ;;  %v3819_v17 = vld [vmem:[#allocation5 + $0xe4] ss:$8 sps:$4 sm:$0xff]  }
 0x46f   :  { %1506 = vmatprep.subr.bf16.mxu0 %v3804_v45  ;;  %1411 = vmatprep.mubr.f32.mxu1 %v4234_v1  ;;  %v3864_v43 = vld [vmem:[#allocation8 + $0x12c] ss:$24 sps:$4 sm:$0xff]  }
 0x470   :  { %v3867_v45 = vld [vmem:[#allocation8 + $0x154] ss:$24 sps:$4 sm:$0xff]  }
 0x472   :  { %1507 = vmatpush1.bf16.msra.mxu0 %v3802_v46  ;;  %v3865_v46 = vld [vmem:[#allocation8 + $0x150] ss:$24 sps:$4 sm:$0xff]  }
 0x473   :  { %1508 = vmatprep.subr.bf16.mxu0 %v3807_v47  ;;  %v3870_v47 = vld [vmem:[#allocation8 + $0x15c] ss:$24 sps:$4 sm:$0xff]  }
 0x476   :  { %1509 = vmatpush1.bf16.msra.mxu0 %v3805_v48  ;;  %v3868_v48 = vld [vmem:[#allocation8 + $0x158] ss:$24 sps:$4 sm:$0xff]  }
 0x477   :  { %1510 = vmatprep.subr.bf16.mxu0 %v3810_v49  ;;  %v3873_v49 = vld [vmem:[#allocation8 + $0x184] ss:$24 sps:$4 sm:$0xff]  }
 0x47a   :  { %1511 = vmatpush1.bf16.msra.mxu0 %v3808_v50  ;;  %v3871_v50 = vld [vmem:[#allocation8 + $0x180] ss:$24 sps:$4 sm:$0xff]  }
 0x47b   :  { %1512 = vmatprep.subr.bf16.mxu0 %v3813_v51  ;;  %v3876_v51 = vld [vmem:[#allocation8 + $0x18c] ss:$24 sps:$4 sm:$0xff]  }
 0x47e   :  { %1513 = vmatpush1.bf16.msra.mxu0 %v3811_v52  ;;  %v3874_v52 = vld [vmem:[#allocation8 + $0x188] ss:$24 sps:$4 sm:$0xff]  }
 0x47f   :  { %1514 = vmatprep.subr.bf16.mxu0 %v3816_v53  ;;  %v3879_v53 = vld [vmem:[#allocation8 + $0x1b4] ss:$24 sps:$4 sm:$0xff]  }
 0x482   :  { %1515 = vmatpush1.bf16.msra.mxu0 %v3814_v54  ;;  %v3877_v54 = vld [vmem:[#allocation8 + $0x1b0] ss:$24 sps:$4 sm:$0xff]  }
 0x483   :  { %1516 = vmatprep.subr.bf16.mxu0 %v3819_v17  ;;  %v3882_v17 = vld [vmem:[#allocation8 + $0x1bc] ss:$24 sps:$4 sm:$0xff]  }
 0x486   :  { %1517 = vmatpush1.bf16.msra.mxu0 %v3817_v55  ;;  %v3880_v55 = vld [vmem:[#allocation8 + $0x1b8] ss:$24 sps:$4 sm:$0xff]  }
 0x487   :  { %1518 = vmatprep.subr.bf16.mxu0 %v3822_v56  ;;  %v3885_v56 = vld [vmem:[#allocation8 + $0x1e4] ss:$24 sps:$4 sm:$0xff]  }
 0x48a   :  { %1519 = vmatpush1.bf16.msra.mxu0 %v3820_v57  ;;  %v3883_v57 = vld [vmem:[#allocation8 + $0x1e0] ss:$24 sps:$4 sm:$0xff]  }
 0x48b   :  { %2443 = vmatprep.subr.bf16.mxu0 %v3828_v18  ;;  %v3913_v18 = vld [vmem:[#allocation8 + $0x2d0] ss:$24 sps:$4 sm:$0xff]  }
 0x48d   :  { %1537 = vmatmul.mubr.bf16.vlgmr.msra.gmra.mrb[20].mxu0 %v1038_v44  ;;  %v3862_v44 = vld [vmem:[#allocation8 + $0x128] ss:$24 sps:$4 sm:$0xff]  }
 0x48e   :  { %2444 = vmatpush1.bf16.msra.mxu0 %v3826_v19  ;;  %v3915_v19 = vld [vmem:[#allocation8 + $0x2d4] ss:$24 sps:$4 sm:$0xff]  }
 0x48f   :  { %2445 = vmatprep.subr.bf16.mxu0 %v3834_v22  ;;  %v3921_v22 = vld [vmem:[#allocation8 + $0x14] ss:$24 sps:$4 sm:$0xff]  }
 0x492   :  { %2446 = vmatpush1.bf16.msra.mxu0 %v3832_v23  ;;  %v1636_v23 = vlaneseq }
 0x493   :  { %2447 = vmatprep.subr.bf16.mxu0 %v3840_v26 }
 0x496   :  { %2448 = vmatpush1.bf16.msra.mxu0 %v3838_v27 }
 0x497   :  { %2449 = vmatprep.subr.bf16.mxu0 %v3846_v31 }
 0x49a   :  { %2450 = vmatpush1.bf16.msra.mxu0 %v3844_v32  ;;  %v1634_v32 = vld [vmem:[%s4707_s10] sm:$0x3] }
 0x49b   :  { %2451 = vmatprep.subr.bf16.mxu0 %v3852_v35 }
 0x49e   :  { %2452 = vmatpush1.bf16.msra.mxu0 %v3850_v36 }
 0x49f   :  { %2453 = vmatprep.subr.bf16.mxu0 %v3858_v39 }
 0x4a2   :  { %2454 = vmatpush1.bf16.msra.mxu0 %v3856_v40 }
 0x4a3   :  { %2455 = vmatprep.subr.bf16.mxu0 %v3864_v43 }
 0x4a6   :  { %2456 = vmatpush1.bf16.msra.mxu0 %v3862_v44 }
 0x4a7   :  { %2457 = vmatprep.subr.bf16.mxu0 %v3870_v47 }
 0x4aa   :  { %2458 = vmatpush1.bf16.msra.mxu0 %v3868_v48 }
 0x4ab   :  { %2459 = vmatprep.subr.bf16.mxu0 %v3876_v51 }
 0x4ae   :  { %2460 = vmatpush1.bf16.msra.mxu0 %v3874_v52 }
 0x4af   :  { %2461 = vmatprep.subr.bf16.mxu0 %v3882_v17 }
 0x4b2   :  { %2462 = vmatpush1.bf16.msra.mxu0 %v3880_v55 }
 0x540   :  { %v1169_v58 = vpop.f32.mrb[20].mxu1  ;;  %v1326_v59 = vpop.f32.mrb[16].mxu0 }
 0x541   :  { %v1171_v60 = vpop.f32.mrb[21].mxu1  ;;  %v1328_v61 = vpop.f32.mrb[17].mxu0 }
 0x542   :  { %v1173_v62 = vpop.f32.mrb[22].mxu1  ;;  %v1330_v63 = vpop.f32.mrb[18].mxu0 }
 0x543   :  { %v3717_v0 = vpack.c.bf16 %v1173_v62, %v1169_v58  ;;  %v3721_v2 = vpack.c.bf16 %v1330_v63, %v1326_v59  ;;  %v1175_v3 = vpop.f32.mrb[23].mxu1  ;;  %v1332_v4 = vpop.f32.mrb[19].mxu0  ;;  %v3888_v58 = vld [vmem:[#allocation8 + $0x1ec] ss:$24 sps:$4 sm:$0xff]   ;;  %v3886_v59 = vld [vmem:[#allocation8 + $0x1e8] ss:$24 sps:$4 sm:$0xff]  }
 0x544   :  { %v3715_v5 = vpack.c.bf16 %v1175_v3, %v1171_v60  ;;  %v3719_v6 = vpack.c.bf16 %v1332_v4, %v1328_v61  ;;  %2463 = vmatprep.subr.bf16.mxu0 %v3888_v58  ;;  %v3891_v60 = vld [vmem:[#allocation8 + $0x214] ss:$24 sps:$4 sm:$0xff]   ;;  %v3889_v61 = vld [vmem:[#allocation8 + $0x210] ss:$24 sps:$4 sm:$0xff]  }
 0x545   :  { %2464 = vmatpush1.bf16.msra.mxu0 %v3886_v59  ;;  %v3894_v62 = vld [vmem:[#allocation8 + $0x21c] ss:$24 sps:$4 sm:$0xff]   ;;  %v3892_v63 = vld [vmem:[#allocation8 + $0x218] ss:$24 sps:$4 sm:$0xff]   ;;  %v3900_v3 = vld [vmem:[#allocation8 + $0x24c] ss:$24 sps:$4 sm:$0xff]  }
 0x546   :  { %3716 = vmatprep.subr.bf16.mxu1 %v3715_v5  ;;  %2465 = vmatprep.subr.bf16.mxu0 %v3894_v62  ;;  %v3898_v4 = vld [vmem:[#allocation8 + $0x248] ss:$24 sps:$4 sm:$0xff]   ;;  %v3903_v5 = vld [vmem:[#allocation8 + $0x274] ss:$24 sps:$4 sm:$0xff]  }
 0x547   :  { %3718 = vmatpush1.bf16.msra.mxu1 %v3717_v0  ;;  %v3897_v0 = vld [vmem:[#allocation8 + $0x244] ss:$24 sps:$4 sm:$0xff]  }
 0x548   :  { %3720 = vmatprep.subr.bf16.mxu1 %v3719_v6  ;;  %v3901_v6 = vld [vmem:[#allocation8 + $0x270] ss:$24 sps:$4 sm:$0xff]  }
 0x549   :  { %2466 = vmatpush1.bf16.msra.mxu0 %v3892_v63 }
 0x54a   :  { %3385 = vmatmul.mubr.msk.f32.vlgmr.msra.gmra.mrb[18].mxu1 %vm271_vm3, %v1336_v7  ;;  %2467 = vmatprep.subr.bf16.mxu0 %v3900_v3  ;;  %v3906_v7 = vld [vmem:[#allocation8 + $0x27c] ss:$24 sps:$4 sm:$0xff]  }
 0x54b   :  { %3722 = vmatpush1.bf16.msra.mxu1 %v3721_v2  ;;  %1417 = vmatprep.mubr.f32.mxu1 %v4234_v1  ;;  %v3895_v2 = vld [vmem:[#allocation8 + $0x240] ss:$24 sps:$4 sm:$0xff]  }
 0x54c   :  { %2400 = vmatprep.subr.bf16.mxu1 %v3825_v16  ;;  %v3910_v16 = vld [vmem:[#allocation8 + $0x2a8] ss:$24 sps:$4 sm:$0xff]  }
 0x54d   :  { %2468 = vmatpush1.bf16.msra.mxu0 %v3898_v4 }
 0x54e   :  { %3386 = vmatmul.mubr.msk.f32.gmra.mrb[24].mxu1 %vm271_vm3, %v1337_v8  ;;  %v3904_v8 = vld [vmem:[#allocation8 + $0x278] ss:$24 sps:$4 sm:$0xff]   ;;  %2469 = vmatprep.subr.bf16.mxu0 %v3906_v7 }
 0x54f   :  { %1617 = vmatprep.mubr.f32.mxu1 %v4234_v1 }
 0x551   :  { %2470 = vmatpush1.bf16.msra.mxu0 %v3904_v8 }
 0x552   :  { %3403 = vmatmul.mubr.msk.f32.vlgmr.msra.gmra.mrb[26].mxu1 %vm271_vm3, %v1339_v9  ;;  %v3909_v9 = vld [vmem:[#allocation8 + $0x2a4] ss:$24 sps:$4 sm:$0xff]  }
 0x553   :  { %1623 = vmatprep.mubr.f32.mxu1 %v4234_v1  ;;  %2401 = vmatpush1.bf16.msra.mxu1 %v3823_v15  ;;  %v3912_v15 = vld [vmem:[#allocation8 + $0x2ac] ss:$24 sps:$4 sm:$0xff]  }
 0x554   :  { %2402 = vmatprep.subr.bf16.mxu1 %v3831_v20  ;;  %2471 = vmatprep.subr.bf16.mxu0 %v3912_v15  ;;  %v3916_v20 = vld [vmem:[#allocation8 + $0x2d8] ss:$24 sps:$4 sm:$0xff]  }
 0x555   :  { %2472 = vmatpush1.bf16.msra.mxu0 %v3910_v16 }
 0x556   :  { %3404 = vmatmul.mubr.msk.f32.gmra.mrb[28].mxu1 %vm271_vm3, %v1340_v10  ;;  %v3907_v10 = vld [vmem:[#allocation8 + $0x2a0] ss:$24 sps:$4 sm:$0xff]  }
 0x557   :  { %2403 = vmatpush1.bf16.msra.mxu1 %v3829_v21  ;;  %v3918_v21 = vld [vmem:[#allocation8 + $0x2dc] ss:$24 sps:$4 sm:$0xff]  }
 0x558   :  { %2404 = vmatprep.subr.bf16.mxu1 %v3837_v24  ;;  %2473 = vmatprep.subr.bf16.mxu0 %v3918_v21  ;;  %v4564_v24 = vshrl.u32 %v1636_v23, 7 }
 0x559   :  { %2474 = vmatpush1.bf16.msra.mxu0 %v3916_v20 }
 0x55b   :  { %2405 = vmatpush1.bf16.msra.mxu1 %v3835_v25 }
 0x55c   :  { %2406 = vmatprep.subr.bf16.mxu1 %v3843_v28 }
 0x55f   :  { %2407 = vmatpush1.bf16.msra.mxu1 %v3841_v29  ;;  %v4569_v29 = vsub.s32 0, %v4564_v24 }
 0x560   :  { %v4556_v11 = vpop.f32.mrb[20].mxu0  ;;  %2408 = vmatprep.subr.bf16.mxu1 %v3849_v33  ;;  %v4575_v33 = vsub.s32 1, %v4564_v24 }
 0x561   :  { %v4558_v12 = vpop.f32.mrb[21].mxu0 }
 0x562   :  { %v4560_v13 = vpop.f32.mrb[22].mxu0  ;;  %v1643_v39 = vrot.slane %v1634_v32, %v4575_v33 }
 0x563   :  { %v4562_v14 = vpop.f32.mrb[23].mxu0  ;;  %2409 = vmatpush1.bf16.msra.mxu1 %v3847_v34 }
 0x564   :  { %2410 = vmatprep.subr.bf16.mxu1 %v3855_v37 }
 0x567   :  { %2411 = vmatpush1.bf16.msra.mxu1 %v3853_v38  ;;  %v1666_v38 = vld [vmem:[%s4709_s12] sm:$0x3] }
 0x568   :  { %2412 = vmatprep.subr.bf16.mxu1 %v3861_v41  ;;  %v1671_v44 = vrot.slane %v1666_v38, %v4569_v29 }
 0x56b   :  { %2413 = vmatpush1.bf16.msra.mxu1 %v3859_v42 }
 0x56c   :  { %2414 = vmatprep.subr.bf16.mxu1 %v3867_v45 }
 0x56f   :  { %2415 = vmatpush1.bf16.msra.mxu1 %v3865_v46  ;;  %v1675_v46 = vrot.slane %v1666_v38, %v4575_v33 }
 0x570   :  { %2416 = vmatprep.subr.bf16.mxu1 %v3873_v49 }
 0x573   :  { %2417 = vmatpush1.bf16.msra.mxu1 %v3871_v50 }
 0x574   :  { %2418 = vmatprep.subr.bf16.mxu1 %v3879_v53 }
 0x577   :  { %2419 = vmatpush1.bf16.msra.mxu1 %v3877_v54 }
 0x578   :  { %2420 = vmatprep.subr.bf16.mxu1 %v3885_v56 }
 0x57b   :  { %2421 = vmatpush1.bf16.msra.mxu1 %v3883_v57 }
 0x57c   :  { %2422 = vmatprep.subr.bf16.mxu1 %v3891_v60 }
 0x57f   :  { %2423 = vmatpush1.bf16.msra.mxu1 %v3889_v61 }
 0x580   :  { %2424 = vmatprep.subr.bf16.mxu1 %v3897_v0 }
 0x583   :  { %2425 = vmatpush1.bf16.msra.mxu1 %v3895_v2 }
 0x584   :  { %2426 = vmatprep.subr.bf16.mxu1 %v3903_v5 }
 0x587   :  { %2427 = vmatpush1.bf16.msra.mxu1 %v3901_v6 }
 0x588   :  { %2428 = vmatprep.subr.bf16.mxu1 %v3909_v9 }
 0x58b   :  { %2429 = vmatpush1.bf16.msra.mxu1 %v3907_v10 }
 0x58c   :  { %2430 = vmatprep.subr.bf16.mxu1 %v3915_v19 }
 0x58f   :  { %2431 = vmatpush1.bf16.msra.mxu1 %v3913_v18 }
 0x590   :  { %2486 = vmatprep.subr.bf16.mxu1 %v3921_v22 }
 0x61d   :  { %v1413_v25 = vpop.f32.mrb[18].mxu1 }
 0x61e   :  { %v1539_v26 = vadd.f32 %v4556_v11, %v1413_v25  ;;  %v1415_v27 = vpop.f32.mrb[19].mxu1  ;;  %v1650_v11 = vld [vmem:[%s4708_s11] sm:$0x3] }
 0x61f   :  { %v1541_v28 = vadd.f32 %v4558_v12, %v1415_v27  ;;  %v1639_v12 = vrot.slane %v1634_v32, %v4569_v29  ;;  %v1655_v41 = vrot.slane %v1650_v11, %v4569_v29 }
 0x621   :  { %v1419_v31 = vpop.f32.mrb[24].mxu1 }
 0x622   :  { %v1543_v34 = vadd.f32 %v4560_v13, %v1419_v31  ;;  %v1421_v35 = vpop.f32.mrb[25].mxu1 }
 0x623   :  { %v1545_v36 = vadd.f32 %v4562_v14, %v1421_v35  ;;  %v1659_v14 = vrot.slane %v1650_v11, %v4575_v33 }
 0x625   :  { %v1619_v37 = vpop.f32.mrb[26].mxu1 }
 0x626   :  { %v1630_v40 = vadd.f32 %v1619_v37, %v1539_v26  ;;  %v1621_v13 = vpop.f32.mrb[27].mxu1 }
 0x627   :  { %v1631_v42 = vadd.f32 %v1621_v13, %v1541_v28 }
 0x628   :  { %v1646_v43 = vadd.f32 %v1639_v12, %v1630_v40 }
 0x629   :  { %v1647_v45 = vadd.f32 %v1643_v39, %v1631_v42  ;;  %v1625_v47 = vpop.f32.mrb[28].mxu1 }
 0x62a   :  { %v1662_v48 = vmul.f32 %v1655_v41, %v1646_v43  ;;  %v1632_v49 = vadd.f32 %v1625_v47, %v1543_v34  ;;  %v1627_v50 = vpop.f32.mrb[29].mxu1 }
 0x62b   :  { %v1663_v51 = vmul.f32 %v1659_v14, %v1647_v45  ;;  %v1633_v52 = vadd.f32 %v1627_v50, %v1545_v36 }
 0x62c   :  { %v4591_v53 = vadd.f32 %v1671_v44, %v1662_v48  ;;  %v1648_v54 = vadd.f32 %v1639_v12, %v1632_v49 }
 0x62d   :  { %v4593_v17 = vadd.f32 %v1675_v46, %v1663_v51  ;;  %v1649_v55 = vadd.f32 %v1643_v39, %v1633_v52 }
 0x62e   :  { %v4596_v56 = vmul.f32 0.70710677, %v4591_v53  ;;  %v1664_v57 = vmul.f32 %v1655_v41, %v1648_v54 }
 0x62f   :  { %v4599_v58 = vmul.f32 0.70710677, %v4593_v17  ;;  %v1665_v59 = vmul.f32 %v1659_v14, %v1649_v55 }
 0x630   :  { %v1698_v60 = vand.u32 2147483647, %v4596_v56  ;;  %v4602_v61 = vadd.f32 %v1671_v44, %v1664_v57  ;;  %vm1690_vm9 = vcmp.lt.f32.partialorder %v4596_v56, 0.0 }
 0x631   :  { %v1699_v62 = vand.u32 2147483647, %v4599_v58  ;;  %v4605_v63 = vadd.f32 %v1675_v46, %v1665_v59  ;;  %vm1691_vm10 = vcmp.lt.f32.partialorder %v4599_v58, 0.0 }
 0x632   :  { %v1702_v0 = vmul.f32 0.3275911, %v1698_v60  ;;  %v4608_v2 = vmul.f32 0.70710677, %v4602_v61  ;;  %v1754_v18 = vsub.f32 0.0, %v1698_v60  ;;  %v1695_v56 = vsel %vm1691_vm10, -1.0, %v4236_v30 }
 0x633   :  { %v1703_v3 = vmul.f32 0.3275911, %v1699_v62  ;;  %v4611_v4 = vmul.f32 0.70710677, %v4605_v63  ;;  %v1755_v19 = vsub.f32 0.0, %v1699_v62 }
 0x634   :  { %v1706_v5 = vadd.f32 1.0, %v1702_v0  ;;  %v1700_v6 = vand.u32 2147483647, %v4608_v2  ;;  %v1758_v21 = vmul.f32 %v1754_v18, %v1698_v60  ;;  %vm1692_vm11 = vcmp.lt.f32.partialorder %v4608_v2, 0.0 }
 0x635   :  { %v1707_v7 = vadd.f32 1.0, %v1703_v3  ;;  %v1701_v8 = vand.u32 2147483647, %v4611_v4  ;;  %v1759_v26 = vmul.f32 %v1755_v19, %v1699_v62  ;;  %vm1693_vm12 = vcmp.lt.f32.partialorder %v4611_v4, 0.0 }
 0x636   :  { %4048 = vrcp.f32 %v1706_v5  ;;  %v1704_v9 = vmul.f32 0.3275911, %v1700_v6  ;;  %v1756_v22 = vsub.f32 0.0, %v1700_v6  ;;  %v1762_v34 = vmul.f32 1.442695, %v1758_v21 }
 0x637   :  { %4050 = vrcp.f32 %v1707_v7  ;;  %v1705_v10 = vmul.f32 0.3275911, %v1701_v8  ;;  %v1757_v27 = vsub.f32 0.0, %v1701_v8  ;;  %v1764_v37 = vmul.f32 1.442695, %v1759_v26 }
 0x638   :  { %v1708_v15 = vadd.f32 1.0, %v1704_v9  ;;  %v1760_v35 = vmul.f32 %v1756_v22, %v1700_v6  ;;  %v1684_v2 = vmul.f32 0.5, %v4602_v61  ;;  %v1685_v4 = vmul.f32 0.5, %v4605_v63  ;;  %v3925_v61 = vld [vmem:[#allocation8 + $0x70] ss:$24 sps:$4 sm:$0xff]  }
 0x639   :  { %v1709_v16 = vadd.f32 1.0, %v1705_v10  ;;  %v1761_v39 = vmul.f32 %v1757_v27, %v1701_v8  ;;  %v1694_v27 = vsel %vm1690_vm9, -1.0, %v4236_v30  ;;  %v3930_v63 = vld [vmem:[#allocation8 + $0xa4] ss:$24 sps:$4 sm:$0xff]  }
 0x63a   :  { %4052 = vrcp.f32 %v1708_v15  ;;  %v1766_v14 = vmul.f32 1.442695, %v1760_v35 }
 0x63b   :  { %4054 = vrcp.f32 %v1709_v16  ;;  %v1768_v47 = vmul.f32 1.442695, %v1761_v39 }
 0x63c   :  { %4056 = vpow2.f32 %v1762_v34 }
 0x63d   :  { %4058 = vpow2.f32 %v1764_v37 }
 0x63e   :  { %4060 = vpow2.f32 %v1766_v14 }
 0x63f   :  { %4062 = vpow2.f32 %v1768_v47 }
 0x640   :  { %v4049_v20 = vpop.eup %4048 }
 0x641   :  { %v4051_v23 = vpop.eup %4050  ;;  %v1718_v25 = vmul.f32 1.0614054, %v4049_v20 }
 0x642   :  { %v1719_v28 = vmul.f32 1.0614054, %v4051_v23 }
 0x643   :  { %v1722_v31 = vadd.f32 -1.4531521, %v1718_v25 }
 0x644   :  { %v4053_v32 = vpop.eup %4052  ;;  %v1723_v36 = vadd.f32 -1.4531521, %v1719_v28 }
 0x645   :  { %v4055_v11 = vpop.eup %4054  ;;  %v1726_v12 = vmul.f32 %v4049_v20, %v1722_v31  ;;  %v1720_v38 = vmul.f32 1.0614054, %v4053_v32 }
 0x646   :  { %v1721_v40 = vmul.f32 1.0614054, %v4055_v11  ;;  %v1727_v41 = vmul.f32 %v4051_v23, %v1723_v36  ;;  %v4057_v8 = vpop.eup %4056 }
 0x647   :  { %v1730_v13 = vadd.f32 1.4214138, %v1726_v12  ;;  %v1724_v42 = vadd.f32 -1.4531521, %v1720_v38  ;;  %v4059_v15 = vpop.eup %4058  ;;  %v1696_v12 = vsel %vm1692_vm11, -1.0, %v4236_v30 }
 0x648   :  { %v1725_v43 = vadd.f32 -1.4531521, %v1721_v40  ;;  %v1731_v44 = vadd.f32 1.4214138, %v1727_v41  ;;  %v4061_v26 = vpop.eup %4060  ;;  %v1682_v41 = vmul.f32 0.5, %v4591_v53 }
 0x649   :  { %v1734_v45 = vmul.f32 %v4049_v20, %v1730_v13  ;;  %v1728_v46 = vmul.f32 %v4053_v32, %v1724_v42  ;;  %v4063_v31 = vpop.eup %4062  ;;  %v1683_v42 = vmul.f32 0.5, %v4593_v17  ;;  %v3922_v53 = vld [vmem:[#allocation8 + $0x40] ss:$24 sps:$4 sm:$0xff]   ;;  %v3927_v17 = vld [vmem:[#allocation8 + $0x74] ss:$24 sps:$4 sm:$0xff]  }
 0x64a   :  { %v1729_v48 = vmul.f32 %v4055_v11, %v1725_v43  ;;  %v1735_v49 = vmul.f32 %v4051_v23, %v1731_v44 }
 0x64b   :  { %v1738_v50 = vadd.f32 -0.28449672, %v1734_v45  ;;  %v1732_v51 = vadd.f32 1.4214138, %v1728_v46 }
 0x64c   :  { %v1733_v52 = vadd.f32 1.4214138, %v1729_v48  ;;  %v1739_v54 = vadd.f32 -0.28449672, %v1735_v49  ;;  %v3919_v49 = vld [vmem:[#allocation8 + $0x10] ss:$24 sps:$4 sm:$0xff]  }
 0x64d   :  { %v1742_v55 = vmul.f32 %v4049_v20, %v1738_v50  ;;  %v1736_v57 = vmul.f32 %v4053_v32, %v1732_v51  ;;  %v3924_v50 = vld [vmem:[#allocation8 + $0x44] ss:$24 sps:$4 sm:$0xff]   ;;  %v3928_v51 = vld [vmem:[#allocation8 + $0xa0] ss:$24 sps:$4 sm:$0xff]  }
 0x64e   :  { %v1737_v59 = vmul.f32 %v4055_v11, %v1733_v52  ;;  %v1743_v60 = vmul.f32 %v4051_v23, %v1739_v54  ;;  %v3933_v52 = vld [vmem:[#allocation8 + $0xd4] ss:$24 sps:$4 sm:$0xff]   ;;  %v3931_v54 = vld [vmem:[#allocation8 + $0xd0] ss:$24 sps:$4 sm:$0xff]  }
 0x64f   :  { %v1746_v62 = vadd.f32 0.2548296, %v1742_v55  ;;  %v1740_v0 = vadd.f32 -0.28449672, %v1736_v57  ;;  %v3936_v55 = vld [vmem:[#allocation8 + $0x104] ss:$24 sps:$4 sm:$0xff]  }
 0x650   :  { %v1741_v3 = vadd.f32 -0.28449672, %v1737_v59  ;;  %v1747_v5 = vadd.f32 0.2548296, %v1743_v60  ;;  %v3934_v57 = vld [vmem:[#allocation8 + $0x100] ss:$24 sps:$4 sm:$0xff]  }
 0x651   :  { %v1750_v6 = vmul.f32 %v4049_v20, %v1746_v62  ;;  %v1744_v7 = vmul.f32 %v4053_v32, %v1740_v0  ;;  %v3939_v59 = vld [vmem:[#allocation8 + $0x134] ss:$24 sps:$4 sm:$0xff]   ;;  %v3937_v60 = vld [vmem:[#allocation8 + $0x130] ss:$24 sps:$4 sm:$0xff]   ;;  %v3942_v62 = vld [vmem:[#allocation8 + $0x164] ss:$24 sps:$4 sm:$0xff]  }
 0x652   :  { %v1745_v9 = vmul.f32 %v4055_v11, %v1741_v3  ;;  %v1751_v10 = vmul.f32 %v4051_v23, %v1747_v5  ;;  %v3940_v0 = vld [vmem:[#allocation8 + $0x160] ss:$24 sps:$4 sm:$0xff]   ;;  %v3945_v3 = vld [vmem:[#allocation8 + $0x194] ss:$24 sps:$4 sm:$0xff]   ;;  %v3943_v5 = vld [vmem:[#allocation8 + $0x190] ss:$24 sps:$4 sm:$0xff]  }
 0x653   :  { %v1770_v16 = vmul.f32 %v4057_v8, %v1750_v6  ;;  %v1748_v18 = vadd.f32 0.2548296, %v1744_v7  ;;  %v3948_v6 = vld [vmem:[#allocation8 + $0x1c4] ss:$24 sps:$4 sm:$0xff]   ;;  %v3946_v7 = vld [vmem:[#allocation8 + $0x1c0] ss:$24 sps:$4 sm:$0xff]  }
 0x654   :  { %v1749_v19 = vadd.f32 0.2548296, %v1745_v9  ;;  %v1771_v21 = vmul.f32 %v4059_v15, %v1751_v10  ;;  %v3951_v8 = vld [vmem:[#allocation8 + $0x1f4] ss:$24 sps:$4 sm:$0xff]   ;;  %v3949_v9 = vld [vmem:[#allocation8 + $0x1f0] ss:$24 sps:$4 sm:$0xff]  }
 0x655   :  { %v1774_v22 = vsub.f32 1.0, %v1770_v16  ;;  %v1752_v25 = vmul.f32 %v4053_v32, %v1748_v18  ;;  %v3954_v10 = vld [vmem:[#allocation8 + $0x224] ss:$24 sps:$4 sm:$0xff]   ;;  %v3952_v15 = vld [vmem:[#allocation8 + $0x220] ss:$24 sps:$4 sm:$0xff]  }
 0x656   :  { %v1753_v28 = vmul.f32 %v4055_v11, %v1749_v19  ;;  %v1775_v20 = vsub.f32 1.0, %v1771_v21  ;;  %v1697_v11 = vsel %vm1693_vm12, -1.0, %v4236_v30  ;;  %v3957_v16 = vld [vmem:[#allocation8 + $0x254] ss:$24 sps:$4 sm:$0xff]   ;;  %v3955_v18 = vld [vmem:[#allocation8 + $0x250] ss:$24 sps:$4 sm:$0xff]  }
 0x657   :  { %v1778_v34 = vmul.f32 %v1774_v22, %v1694_v27  ;;  %v1772_v23 = vmul.f32 %v4061_v26, %v1752_v25  ;;  %v3960_v19 = vld [vmem:[#allocation8 + $0x284] ss:$24 sps:$4 sm:$0xff]   ;;  %v3958_v21 = vld [vmem:[#allocation8 + $0x280] ss:$24 sps:$4 sm:$0xff]   ;;  %v3963_v22 = vld [vmem:[#allocation8 + $0x2b4] ss:$24 sps:$4 sm:$0xff]  }
 0x658   :  { %v1773_v35 = vmul.f32 %v4063_v31, %v1753_v28  ;;  %v1779_v58 = vmul.f32 %v1775_v20, %v1695_v56  ;;  %v3961_v25 = vld [vmem:[#allocation8 + $0x2b0] ss:$24 sps:$4 sm:$0xff]   ;;  %v3966_v26 = vld [vmem:[#allocation8 + $0x2e4] ss:$24 sps:$4 sm:$0xff]   ;;  %v3964_v27 = vld [vmem:[#allocation8 + $0x2e0] ss:$24 sps:$4 sm:$0xff]  }
 0x659   :  { %v1776_v36 = vsub.f32 1.0, %v1772_v23  ;;  %v1782_v37 = vadd.f32 1.0, %v1778_v34  ;;  %v2533_v28 = vld [vmem:[%s4711_s14] sm:$0xff]  ;;  %v1900_v23 = vsub.s32 2, %v4564_v24 }
 0x65a   :  { %v1777_v32 = vsub.f32 1.0, %v1773_v35  ;;  %v1783_v40 = vadd.f32 1.0, %v1779_v58  ;;  %v2555_v20 = vcombine.high %v2533_v28, %v2533_v28  ;;  %v4638_v31 = vld [vmem:[%s4713_s16] sm:$0x3f]  ;;  %v1904_v35 = vsub.s32 3, %v4564_v24 }
 0x65b   :  { %v1780_v38 = vmul.f32 %v1776_v36, %v1696_v12  ;;  %v1786_v43 = vmul.f32 %v1782_v37, %v1682_v41  ;;  %v1893_v34 = vrot.slane %v4638_v31, %v4569_v29  ;;  %v1897_v56 = vrot.slane %v4638_v31, %v4575_v33 }
 0x65c   :  { %v1781_v39 = vmul.f32 %v1777_v32, %v1697_v11  ;;  %v1787_v45 = vmul.f32 %v1783_v40, %v1683_v42  ;;  %2557 = vmatprep.subr.mxu0 %v2555_v20  ;;  %v2536_v32 = vsub.s32 7, %v4564_v24  ;;  %v1901_v37 = vrot.slane %v4638_v31, %v1900_v23 }
 0x65d   :  { %v1784_v13 = vadd.f32 1.0, %v1780_v38  ;;  %v1905_v40 = vrot.slane %v4638_v31, %v1904_v35 }
 0x65e   :  { %v1785_v14 = vadd.f32 1.0, %v1781_v39 }
 0x65f   :  { %v1788_v44 = vmul.f32 %v1784_v13, %v1684_v2 }
 0x660   :  { %v1789_v46 = vmul.f32 %v1785_v14, %v1685_v4 }
 0x661   :  { %v4627_v47 = vpack.c.bf16 %v1788_v44, %v1786_v43 }
 0x662   :  { %v1791_v48 = vpack.c.bf16 %v1789_v46, %v1787_v45 }
 0x664   :  { %2432 = vmatprep.mubr.bf16.mxu1 %v1791_v48  ;;  %2475 = vmatprep.mubr.bf16.mxu0 %v1791_v48 }
 0x665   :  { %2433 = vmatmul.mubr.bf16.vlgmr.msra.gmra.mrb[32].mxu1 %v4627_v47  ;;  %2476 = vmatmul.mubr.bf16.vlgmr.msra.gmra.mrb[24].mxu0 %v4627_v47 }
 0x666   :  { %2487 = vmatpush1.bf16.msra.mxu1 %v3919_v49  ;;  %2518 = vmatprep.mubr.bf16.mxu1 %v1791_v48 }
 0x667   :  { %2488 = vmatprep.subr.bf16.mxu1 %v3924_v50  ;;  %2558 = vmatpush1.xpose.msra.mxu0 %v2533_v28 }
 0x668   :  { %3501 = vmatprep.subr.msk.mxu0 %vm2676_vm13, %v2555_v20 }
 0x66a   :  { %2489 = vmatpush1.bf16.msra.mxu1 %v3922_v53 }
 0x66b   :  { %2490 = vmatprep.subr.bf16.mxu1 %v3927_v17 }
 0x66e   :  { %2491 = vmatpush1.bf16.msra.mxu1 %v3925_v61 }
 0x66f   :  { %2492 = vmatprep.subr.bf16.mxu1 %v3930_v63 }
 0x672   :  { %2493 = vmatpush1.bf16.msra.mxu1 %v3928_v51 }
 0x673   :  { %2494 = vmatprep.subr.bf16.mxu1 %v3933_v52 }
 0x676   :  { %2495 = vmatpush1.bf16.msra.mxu1 %v3931_v54 }
 0x677   :  { %2496 = vmatprep.subr.bf16.mxu1 %v3936_v55 }
 0x67a   :  { %2497 = vmatpush1.bf16.msra.mxu1 %v3934_v57 }
 0x67b   :  { %2498 = vmatprep.subr.bf16.mxu1 %v3939_v59 }
 0x67e   :  { %2499 = vmatpush1.bf16.msra.mxu1 %v3937_v60 }
 0x67f   :  { %2500 = vmatprep.subr.bf16.mxu1 %v3942_v62 }
 0x682   :  { %2501 = vmatpush1.bf16.msra.mxu1 %v3940_v0  ;;  %v3970_v0 = vld [vmem:[#allocation10 + $0x4] ss:$8 sps:$4 sm:$0xff]  }
 0x683   :  { %2502 = vmatprep.subr.bf16.mxu1 %v3945_v3 }
 0x686   :  { %2503 = vmatpush1.bf16.msra.mxu1 %v3943_v5 }
 0x687   :  { %2504 = vmatprep.subr.bf16.mxu1 %v3948_v6 }
 0x68a   :  { %2505 = vmatpush1.bf16.msra.mxu1 %v3946_v7 }
 0x68b   :  { %2506 = vmatprep.subr.bf16.mxu1 %v3951_v8 }
 0x68e   :  { %2507 = vmatpush1.bf16.msra.mxu1 %v3949_v9 }
 0x68f   :  { %2508 = vmatprep.subr.bf16.mxu1 %v3954_v10 }
 0x692   :  { %2509 = vmatpush1.bf16.msra.mxu1 %v3952_v15 }
 0x693   :  { %2510 = vmatprep.subr.bf16.mxu1 %v3957_v16 }
 0x696   :  { %2511 = vmatpush1.bf16.msra.mxu1 %v3955_v18 }
 0x697   :  { %2512 = vmatprep.subr.bf16.mxu1 %v3960_v19 }
 0x69a   :  { %2513 = vmatpush1.bf16.msra.mxu1 %v3958_v21 }
 0x69b   :  { %2514 = vmatprep.subr.bf16.mxu1 %v3963_v22 }
 0x69e   :  { %2515 = vmatpush1.bf16.msra.mxu1 %v3961_v25 }
 0x69f   :  { %2516 = vmatprep.subr.bf16.mxu1 %v3966_v26 }
 0x6a2   :  { %2517 = vmatpush1.bf16.msra.mxu1 %v3964_v27 }
 0x6a5   :  { %2519 = vmatmul.mubr.bf16.vlgmr.msra.gmra.mrb[36].mxu1 %v4627_v47 }
 0x738   :  { %v2434_v58 = vpop.f32.mrb[32].mxu1  ;;  %v2477_v36 = vpop.f32.mrb[24].mxu0 }
 0x739   :  { %v2435_v12 = vadd.f32 %v2434_v58, %v1893_v34  ;;  %v2436_v38 = vpop.f32.mrb[33].mxu1  ;;  %v2479_v11 = vpop.f32.mrb[25].mxu0  ;;  %v2478_v46 = vadd.f32 %v2477_v36, %v1901_v37 }
 0x73a   :  { %v2437_v39 = vadd.f32 %v2436_v38, %v1897_v56  ;;  %v2438_v41 = vpop.f32.mrb[34].mxu1  ;;  %v2481_v2 = vpop.f32.mrb[26].mxu0  ;;  %v2480_v49 = vadd.f32 %v2479_v11, %v1905_v40 }
 0x73b   :  { %v2529_v13 = vmul.f32 0.125, %v2435_v12  ;;  %v2439_v42 = vadd.f32 %v2438_v41, %v1893_v34  ;;  %v2440_v4 = vpop.f32.mrb[35].mxu1  ;;  %v2483_v14 = vpop.f32.mrb[27].mxu0  ;;  %v2482_v61 = vadd.f32 %v2481_v2, %v1901_v37 }
 0x73c   :  { %v2530_v43 = vmul.f32 0.125, %v2437_v39  ;;  %v2441_v44 = vadd.f32 %v2440_v4, %v1897_v56  ;;  %v2484_v52 = vadd.f32 %v2483_v14, %v1905_v40 }
 0x73d   :  { %v2537_v45 = vrot.slane %v2529_v13, %v2536_v32  ;;  %v2531_v47 = vmul.f32 0.125, %v2439_v42 }
 0x73e   :  { %v2541_v48 = vrot.slane %v2530_v43, %v2536_v32  ;;  %v2532_v50 = vmul.f32 0.125, %v2441_v44 }
 0x73f   :  { %v2550_v53 = vmul.f32 %v2537_v45, %v2478_v46  ;;  %v2545_v17 = vrot.slane %v2531_v47, %v2536_v32  ;;  %v3968_v45 = vld [vmem:[#allocation10] ss:$8 sps:$4 sm:$0xff]   ;;  %v3973_v47 = vld [vmem:[#allocation10 + $0x14] ss:$8 sps:$4 sm:$0xff]  }
 0x740   :  { %v2551_v63 = vmul.f32 %v2541_v48, %v2480_v49  ;;  %v2549_v51 = vrot.slane %v2532_v50, %v2536_v32  ;;  %v3971_v49 = vld [vmem:[#allocation10 + $0x10] ss:$8 sps:$4 sm:$0xff]  }
 0x741   :  { %v2552_v54 = vmul.f32 %v2545_v17, %v2482_v61  ;;  %v3974_v17 = vld [vmem:[#allocation10 + $0x20] ss:$8 sps:$4 sm:$0xff]   ;;  %v3979_v61 = vld [vmem:[#allocation10 + $0x34] ss:$8 sps:$4 sm:$0xff]  }
 0x742   :  { %v2553_v55 = vmul.f32 %v2549_v51, %v2484_v52  ;;  %2621 = vmatprep.mubr.f32.mxu0 %v2551_v63  ;;  %v3977_v63 = vld [vmem:[#allocation10 + $0x30] ss:$8 sps:$4 sm:$0xff]   ;;  %v3982_v51 = vld [vmem:[#allocation10 + $0x44] ss:$8 sps:$4 sm:$0xff]   ;;  %v3980_v52 = vld [vmem:[#allocation10 + $0x40] ss:$8 sps:$4 sm:$0xff]  }
 0x743   :  { %2622 = vmatmul.mubr.f32.vlgmr.msra.gmra.mrb[6].mxu0 %v2550_v53  ;;  %v3976_v53 = vld [vmem:[#allocation10 + $0x24] ss:$8 sps:$4 sm:$0xff]  }
 0x744   :  { %2626 = vmatprep.mubr.f32.mxu0 %v2553_v55  ;;  %3502 = vmatpush1.msk.msra.mxu0 %vm2676_vm13, %v2533_v28  ;;  %v3988_v55 = vld [vmem:[#allocation10 + $0x64] ss:$8 sps:$4 sm:$0xff]  }
 0x745   :  { %3009 = vmatprep.subr.bf16.mxu0 %v3970_v0  ;;  %v3986_v0 = vld [vmem:[#allocation10 + $0x60] ss:$8 sps:$4 sm:$0xff]  }
 0x747   :  { %2627 = vmatmul.mubr.f32.gmra.mrb[28].mxu0 %v2552_v54  ;;  %v3985_v54 = vld [vmem:[#allocation10 + $0x54] ss:$8 sps:$4 sm:$0xff]  }
 0x748   :  { %2745 = vmatprep.mubr.f32.mxu0 %v4234_v1 }
 0x778   :  { %v4650_v57 = vpop.f32.mrb[36].mxu1 }
 0x779   :  { %v4652_v59 = vpop.f32.mrb[37].mxu1 }
 0x77a   :  { %v4654_v60 = vpop.f32.mrb[38].mxu1 }
 0x77b   :  { %v4656_v62 = vpop.f32.mrb[39].mxu1 }
 0x816   :  { %v2623_v3 = vpop.f32.mrb[6].mxu0 }
 0x817   :  { %v2632_v5 = vsel %vm169_vm2, %v2623_v3, -inf  ;;  %v2625_v6 = vpop.f32.mrb[7].mxu0 }
 0x818   :  { %v2633_v7 = vrot.slane %v2632_v5, 4  ;;  %v3994_v6 = vld [vmem:[#allocation10 + $0x84] ss:$8 sps:$4 sm:$0xff]  }
 0x81a   :  { %v2634_v8 = vmax.f32 %v2632_v5, %v2633_v7  ;;  %v2628_v9 = vpop.f32.mrb[28].mxu0  ;;  %v3989_v5 = vld [vmem:[#allocation10 + $0x70] ss:$8 sps:$4 sm:$0xff]   ;;  %v3992_v7 = vld [vmem:[#allocation10 + $0x80] ss:$8 sps:$4 sm:$0xff]  }
 0x81b   :  { %v2639_v10 = vsel %vm169_vm2, %v2628_v9, -inf  ;;  %v2630_v15 = vpop.f32.mrb[29].mxu0 }
 0x81c   :  { %v2635_v16 = vrot.slane %v2634_v8, 2  ;;  %v2640_v18 = vrot.slane %v2639_v10, 4  ;;  %v3998_v15 = vld [vmem:[#allocation10 + $0xa0] ss:$8 sps:$4 sm:$0xff]  }
 0x81e   :  { %v2636_v19 = vmax.f32 %v2634_v8, %v2635_v16  ;;  %v2641_v21 = vmax.f32 %v2639_v10, %v2640_v18  ;;  %v3997_v8 = vld [vmem:[#allocation10 + $0x94] ss:$8 sps:$4 sm:$0xff]   ;;  %v4000_v10 = vld [vmem:[#allocation10 + $0xa4] ss:$8 sps:$4 sm:$0xff]   ;;  %v4001_v18 = vld [vmem:[#allocation10 + $0xb0] ss:$8 sps:$4 sm:$0xff]  }
 0x81f   :  { %v4003_v16 = vld [vmem:[#allocation10 + $0xb4] ss:$8 sps:$4 sm:$0xff]  }
 0x820   :  { %v2637_v22 = vrot.slane %v2636_v19, 1  ;;  %v2642_v25 = vrot.slane %v2641_v21, 2 }
 0x822   :  { %v2638_v26 = vmax.f32 %v2636_v19, %v2637_v22  ;;  %v2643_v27 = vmax.f32 %v2641_v21, %v2642_v25  ;;  %v4006_v19 = vld [vmem:[#allocation10 + $0xc4] ss:$8 sps:$4 sm:$0xff]   ;;  %v4004_v21 = vld [vmem:[#allocation10 + $0xc0] ss:$8 sps:$4 sm:$0xff]   ;;  %v4009_v22 = vld [vmem:[#allocation10 + $0xd4] ss:$8 sps:$4 sm:$0xff]  }
 0x823   :  { %v4007_v25 = vld [vmem:[#allocation10 + $0xd0] ss:$8 sps:$4 sm:$0xff]  }
 0x824   :  { %v2646_v28 = vsub.f32 %v2623_v3, %v2638_v26  ;;  %v2644_v20 = vrot.slane %v2643_v27, 1  ;;  %v3991_v3 = vld [vmem:[#allocation10 + $0x74] ss:$8 sps:$4 sm:$0xff]   ;;  %v4012_v26 = vld [vmem:[#allocation10 + $0xe4] ss:$8 sps:$4 sm:$0xff]  }
 0x826   :  { %v2648_v34 = vmul.f32 1.442695, %v2646_v28  ;;  %v2645_v23 = vmax.f32 %v2643_v27, %v2644_v20  ;;  %v4010_v27 = vld [vmem:[#allocation10 + $0xe0] ss:$8 sps:$4 sm:$0xff]   ;;  %v4015_v28 = vld [vmem:[#allocation10 + $0xf4] ss:$8 sps:$4 sm:$0xff]  }
 0x827   :  { %v4013_v20 = vld [vmem:[#allocation10 + $0xf0] ss:$8 sps:$4 sm:$0xff]  }
 0x828   :  { %4064 = vpow2.f32 %v2648_v34  ;;  %v2647_v56 = vsub.f32 %v2628_v9, %v2645_v23  ;;  %v3995_v9 = vld [vmem:[#allocation10 + $0x90] ss:$8 sps:$4 sm:$0xff]   ;;  %v4016_v34 = vld [vmem:[#allocation11 + $0x40] sm:$0xff]  }
 0x829   :  { %v4017_v23 = vld [vmem:[#allocation11] sm:$0xff]   ;;  %3595 = vmatprep.subr.bf16.mxu1 %v4016_v34 }
 0x82a   :  { %v2650_v35 = vmul.f32 1.442695, %v2647_v56  ;;  %v4018_v56 = vld [vmem:[#allocation11 + $0x48] sm:$0xff]   ;;  %3596 = vmatpush3.bf16.msra.mxu1 %v4017_v23 }
 0x82b   :  { %3597 = vmatprep.subr.bf16.mxu1 %v4018_v56 }
 0x82c   :  { %4066 = vpow2.f32 %v2650_v35  ;;  %v4019_v35 = vld [vmem:[#allocation11 + $0x8] sm:$0xff]  }
 0x82e   :  { %3598 = vmatpush3.bf16.msra.mxu1 %v4019_v35 }
 0x832   :  { %v4065_v58 = vpop.eup %4064 }
 0x833   :  { %v2652_v36 = vsel %vm169_vm2, %v4065_v58, 0.0 }
 0x834   :  { %v2653_v12 = vrot.slane %v2652_v36, 4 }
 0x836   :  { %v4067_v32 = vpop.eup %4066  ;;  %v2654_v37 = vadd.f32 %v2653_v12, %v2652_v36  ;;  %v4021_v36 = vld [vmem:[#allocation11 + $0x10] sm:$0xff]   ;;  %v4022_v12 = vld [vmem:[#allocation11 + $0x58] sm:$0xff]  }
 0x837   :  { %v2659_v38 = vsel %vm169_vm2, %v4067_v32, 0.0 }
 0x838   :  { %v2655_v11 = vrot.slane %v2654_v37, 2  ;;  %v2660_v39 = vrot.slane %v2659_v38, 4 }
 0x83a   :  { %v2656_v40 = vadd.f32 %v2655_v11, %v2654_v37  ;;  %v2661_v41 = vadd.f32 %v2660_v39, %v2659_v38  ;;  %v4024_v37 = vld [vmem:[#allocation11 + $0x60] sm:$0xff]   ;;  %v4026_v11 = vld [vmem:[#allocation11 + $0x68] sm:$0xff]  }
 0x83b   :  { %v4025_v38 = vld [vmem:[#allocation11 + $0x20] sm:$0xff]   ;;  %v4027_v39 = vld [vmem:[#allocation11 + $0x28] sm:$0xff]  }
 0x83c   :  { %v2657_v2 = vrot.slane %v2656_v40, 1  ;;  %v2662_v13 = vrot.slane %v2661_v41, 2 }
 0x83e   :  { %v2658_v42 = vadd.f32 %v2657_v2, %v2656_v40  ;;  %v2663_v4 = vadd.f32 %v2662_v13, %v2661_v41  ;;  %v4028_v40 = vld [vmem:[#allocation11 + $0x70] sm:$0xff]   ;;  %v1908_v41 = vsub.s32 4, %v4564_v24  ;;  %v1912_v2 = vsub.s32 5, %v4564_v24 }
 0x840   :  { %4068 = vrcp.f32 %v2658_v42  ;;  %v2664_v14 = vrot.slane %v2663_v4, 1  ;;  %v1909_v13 = vrot.slane %v4638_v31, %v1908_v41  ;;  %v1913_v42 = vrot.slane %v4638_v31, %v1912_v2 }
 0x842   :  { %v2665_v43 = vadd.f32 %v2664_v14, %v2663_v4  ;;  %v2521_v4 = vadd.f32 %v4650_v57, %v1909_v13  ;;  %v2523_v14 = vadd.f32 %v4652_v59, %v1913_v42 }
 0x844   :  { %4070 = vrcp.f32 %v2665_v43 }
 0x84a   :  { %v4069_v44 = vpop.eup %4068 }
 0x84b   :  { %v2667_v46 = vmul.f32 %v4069_v44, %v4065_v58  ;;  %v4020_v58 = vld [vmem:[#allocation11 + $0x50] sm:$0xff]  }
 0x84c   :  { %3599 = vmatprep.subr.bf16.mxu1 %v4020_v58  ;;  %v4029_v58 = vld [vmem:[#allocation11 + $0x30] sm:$0xff]  }
 0x84d   :  { %3503 = vmatmul.mubr.msk.f32.vlgmr.msra.gmra.mrb[30].mxu0 %vm169_vm2, %v2667_v46  ;;  %3600 = vmatpush3.bf16.msra.mxu1 %v4021_v36  ;;  %v4030_v36 = vld [vmem:[#allocation11 + $0x78] sm:$0xff]  }
 0x84e   :  { %v4071_v48 = vpop.eup %4070  ;;  %2751 = vmatprep.mubr.f32.mxu0 %v4234_v1  ;;  %3010 = vmatpush1.bf16.msra.mxu0 %v3968_v45  ;;  %v3983_v1 = vld [vmem:[#allocation10 + $0x50] ss:$8 sps:$4 sm:$0xff]  }
 0x84f   :  { %v2669_v50 = vmul.f32 %v4071_v48, %v4067_v32  ;;  %3011 = vmatprep.subr.bf16.mxu0 %v3973_v47  ;;  %v4023_v32 = vld [vmem:[#allocation11 + $0x18] sm:$0xff]   ;;  %3601 = vmatprep.subr.bf16.mxu1 %v4022_v12  ;;  %v2525_v47 = vadd.f32 %v4654_v60, %v1909_v13 }
 0x850   :  { %v4031_v12 = vld [vmem:[#allocation11 + $0x38] sm:$0xff]  }
 0x851   :  { %3504 = vmatmul.mubr.msk.f32.gmra.mrb[32].mxu0 %vm169_vm2, %v2669_v50  ;;  %3602 = vmatpush3.bf16.msra.mxu1 %v4023_v32  ;;  %v2822_v32 = vld [vmem:[%s4715_s18] sm:$0x3] }
 0x852   :  { %3012 = vmatpush1.bf16.msra.mxu0 %v3971_v49  ;;  %3603 = vmatprep.subr.bf16.mxu1 %v4024_v37  ;;  %v2527_v49 = vadd.f32 %v4656_v62, %v1913_v42  ;;  %v2827_v37 = vrot.slane %v2822_v32, %v4569_v29 }
 0x853   :  { %3013 = vmatprep.subr.bf16.mxu0 %v3976_v53 }
 0x855   :  { %3604 = vmatpush3.bf16.msra.mxu1 %v4025_v38  ;;  %v2831_v38 = vrot.slane %v2822_v32, %v4575_v33 }
 0x856   :  { %3014 = vmatpush1.bf16.msra.mxu0 %v3974_v17  ;;  %3605 = vmatprep.subr.bf16.mxu1 %v4026_v11 }
 0x857   :  { %3015 = vmatprep.subr.bf16.mxu0 %v3979_v61 }
 0x859   :  { %3606 = vmatpush3.bf16.msra.mxu1 %v4027_v39 }
 0x85a   :  { %3016 = vmatpush1.bf16.msra.mxu0 %v3977_v63  ;;  %3607 = vmatprep.subr.bf16.mxu1 %v4028_v40 }
 0x85b   :  { %3017 = vmatprep.subr.bf16.mxu0 %v3982_v51 }
 0x85d   :  { %3608 = vmatpush3.bf16.msra.mxu1 %v4029_v58 }
 0x85e   :  { %3018 = vmatpush1.bf16.msra.mxu0 %v3980_v52  ;;  %3609 = vmatprep.subr.bf16.mxu1 %v4030_v36  ;;  %v3557_v36 = vld [vmem:[#allocation2] ss:$0 sm:$0xff] }
 0x85f   :  { %3019 = vmatprep.subr.bf16.mxu0 %v3985_v54 }
 0x861   :  { %3610 = vmatpush3.bf16.msra.mxu1 %v4031_v12 }
 0x862   :  { %3020 = vmatpush1.bf16.msra.mxu0 %v3983_v1 }
 0x863   :  { %3021 = vmatprep.subr.bf16.mxu0 %v3988_v55 }
 0x866   :  { %3022 = vmatpush1.bf16.msra.mxu0 %v3986_v0 }
 0x867   :  { %3023 = vmatprep.subr.bf16.mxu0 %v3991_v3 }
 0x86a   :  { %3024 = vmatpush1.bf16.msra.mxu0 %v3989_v5 }
 0x86b   :  { %3025 = vmatprep.subr.bf16.mxu0 %v3994_v6 }
 0x86e   :  { %3026 = vmatpush1.bf16.msra.mxu0 %v3992_v7 }
 0x86f   :  { %3027 = vmatprep.subr.bf16.mxu0 %v3997_v8 }
 0x872   :  { %3028 = vmatpush1.bf16.msra.mxu0 %v3995_v9 }
 0x873   :  { %3029 = vmatprep.subr.bf16.mxu0 %v4000_v10 }
 0x876   :  { %3030 = vmatpush1.bf16.msra.mxu0 %v3998_v15 }
 0x877   :  { %3031 = vmatprep.subr.bf16.mxu0 %v4003_v16 }
 0x87a   :  { %3032 = vmatpush1.bf16.msra.mxu0 %v4001_v18 }
 0x87b   :  { %3033 = vmatprep.subr.bf16.mxu0 %v4006_v19 }
 0x87e   :  { %3034 = vmatpush1.bf16.msra.mxu0 %v4004_v21 }
 0x87f   :  { %3035 = vmatprep.subr.bf16.mxu0 %v4009_v22 }
 0x882   :  { %3036 = vmatpush1.bf16.msra.mxu0 %v4007_v25 }
 0x883   :  { %3037 = vmatprep.subr.bf16.mxu0 %v4012_v26 }
 0x886   :  { %3038 = vmatpush1.bf16.msra.mxu0 %v4010_v27 }
 0x887   :  { %3039 = vmatprep.subr.bf16.mxu0 %v4015_v28 }
 0x88a   :  { %3040 = vmatpush1.bf16.msra.mxu0 %v4013_v20 }
 0x920   :  { %v2747_v43 = vpop.f32.mrb[30].mxu0 }
 0x921   :  { %v2758_v44 = vmul.f32 %v2747_v43, %v2521_v4  ;;  %v2749_v45 = vpop.f32.mrb[31].mxu0 }
 0x922   :  { %v2759_v46 = vmul.f32 %v2749_v45, %v2523_v14 }
 0x923   :  { %v2762_v48 = vrot.slane %v2758_v44, 4 }
 0x924   :  { %v2768_v50 = vrot.slane %v2759_v46, 4  ;;  %v2753_v53 = vpop.f32.mrb[32].mxu0 }
 0x925   :  { %v2763_v24 = vadd.f32 %v2762_v48, %v2758_v44  ;;  %v2760_v17 = vmul.f32 %v2753_v53, %v2525_v47  ;;  %v2755_v61 = vpop.f32.mrb[33].mxu0  ;;  %v3537_v44 = vld [vmem:[%s4717_s20] ss:$0 sm:$0xff] }
 0x926   :  { %v2769_v63 = vadd.f32 %v2768_v50, %v2759_v46  ;;  %v2761_v31 = vmul.f32 %v2755_v61, %v2527_v49 }
 0x927   :  { %v2764_v51 = vrot.slane %v2763_v24, 2  ;;  %v2774_v57 = vrot.slane %v2760_v17, 4 }
 0x928   :  { %v2770_v52 = vrot.slane %v2769_v63, 2  ;;  %v2780_v59 = vrot.slane %v2761_v31, 4 }
 0x929   :  { %v2765_v54 = vadd.f32 %v2764_v51, %v2763_v24  ;;  %v2775_v1 = vadd.f32 %v2774_v57, %v2760_v17  ;;  %v3554_v51 = vld [vmem:[%s4718_s21] ss:$0 sm:$0xff] }
 0x92a   :  { %v2771_v55 = vadd.f32 %v2770_v52, %v2769_v63  ;;  %v2781_v0 = vadd.f32 %v2780_v59, %v2761_v31  ;;  %v3555_v52 = vld [vmem:[%s4719_s22] ss:$0 sm:$0xff] }
 0x92b   :  { %v2766_v3 = vrot.slane %v2765_v54, 1  ;;  %v2776_v60 = vrot.slane %v2775_v1, 2 }
 0x92c   :  { %v2772_v5 = vrot.slane %v2771_v55, 1  ;;  %v2782_v6 = vrot.slane %v2781_v0, 2 }
 0x92d   :  { %v2767_v62 = vadd.f32 %v2766_v3, %v2765_v54  ;;  %v2777_v7 = vadd.f32 %v2776_v60, %v2775_v1 }
 0x92e   :  { %v2773_v8 = vadd.f32 %v2772_v5, %v2771_v55  ;;  %v2783_v9 = vadd.f32 %v2782_v6, %v2781_v0 }
 0x92f   :  { %v2778_v10 = vrot.slane %v2777_v7, 1  ;;  %v2786_v16 = vpack.c.bf16 %v2767_v62, %v2767_v62 }
 0x930   :  { %v2784_v15 = vrot.slane %v2783_v9, 1  ;;  %v2787_v19 = vpack.c.bf16 %v2773_v8, %v2773_v8 }
 0x931   :  { %v2779_v18 = vadd.f32 %v2778_v10, %v2777_v7  ;;  %v2838_v26 = vunpack.c.l.b16 %v2786_v16 }
 0x932   :  { %v2785_v21 = vadd.f32 %v2784_v15, %v2783_v9  ;;  %v2839_v28 = vunpack.c.l.b16 %v2787_v19 }
 0x933   :  { %v2788_v22 = vpack.c.bf16 %v2779_v18, %v2779_v18 }
 0x934   :  { %v2789_v25 = vpack.c.bf16 %v2785_v21, %v2785_v21 }
 0x935   :  { %v2840_v27 = vunpack.c.l.b16 %v2788_v22 }
 0x936   :  { %v2841_v20 = vunpack.c.l.b16 %v2789_v25 }
 0x937   :  { %v2843_v34 = vsel %vm2842_vm14, %v2840_v27, %v2838_v26 }
 0x938   :  { %v2844_v23 = vsel %vm2842_vm14, %v2841_v20, %v2839_v28  ;;  %v2845_v35 = vpack.c.b16 %v2843_v34, %v2843_v34 }
 0x939   :  { %v2846_v56 = vpack.c.b16 %v2844_v23, %v2844_v23  ;;  %v3556_v23 = vld [vmem:[%s4720_s23] ss:$0 sm:$0xff] }
 0x93b   :  { %3041 = vmatprep.mubr.bf16.mxu0 %v2846_v56 }
 0x93c   :  { %3042 = vmatmul.mubr.bf16.vlgmr.msra.gmra.mrb[36].mxu0 %v2845_v35 }
 0xa0f   :  { %v3043_v11 = vpop.f32.mrb[36].mxu0 }
 0xa10   :  { %v3044_v39 = vadd.f32 %v3043_v11, %v2827_v37  ;;  %v3045_v40 = vpop.f32.mrb[37].mxu0 }
 0xa11   :  { %v3046_v41 = vadd.f32 %v3045_v40, %v2831_v38  ;;  %v3047_v2 = vpop.f32.mrb[38].mxu0 }
 0xa12   :  { %v3048_v13 = vpop.f32.mrb[39].mxu0  ;;  %v3050_v4 = vpack.c.bf16 %v3044_v39, %v3044_v39 }
 0xa13   :  { %v3051_v42 = vpack.c.bf16 %v3046_v41, %v3046_v41 }
 0xa15   :  { %3219 = vmatprep.mubr.bf16.mxu1 %v3051_v42 }
 0xa16   :  { %3220 = vmatmul.mubr.bf16.vlgmr.msra.gmra.mrb[40].mxu1 %v3050_v4 }
 0xae9   :  { %v3611_v14 = vpop.f32.mrb[40].mxu1 }
 0xaea   :  { %v3612_v43 = vpop.f32.mrb[41].mxu1 }
 0xaeb   :  { %v3613_v45 = vadd.f32 %v3612_v43, %v3611_v14  ;;  %v3614_v29 = vpop.f32.mrb[42].mxu1 }
 0xaec   :  { %v3615_v46 = vpop.f32.mrb[43].mxu1 }
 0xaed   :  { %v3222_v33 = vadd.f32 %v3613_v45, %v3537_v44 }
 0xaef   :  { %v3227_v47 = vsel %vm173_vm1, %v3222_v33, 0.0 }
 0xaf0   :  { %3228 = vadd.xlane.f32.xlu0 %v3227_v47 }
 0xb7d   :  { %v3229_v48 = vpop.xlane.xlu0 %3228 }
 0xb7e   :  { %v3231_v49 = vmul.f32 0.0078125, %v3229_v48 }
 0xb80   :  { %v3232_v50 = vsub.f32 %v3222_v33, %v3231_v49 }
 0xb82   :  { %v3233_v53 = vmul.f32 %v3232_v50, %v3232_v50 }
 0xb84   :  { %v3234_v24 = vsel %vm173_vm1, %v3233_v53, 0.0 }
 0xb85   :  { %3235 = vadd.xlane.f32.xlu0 %v3234_v24 }
 0xc12   :  { %v3236_v17 = vpop.xlane.xlu0 %3235 }
 0xc13   :  { %v3237_v61 = vmul.f32 0.0078125, %v3236_v17 }
 0xc15   :  { %v3238_v63 = vadd.f32 1e-05, %v3237_v61 }
 0xc17   :  { %4072 = vrsqrt.f32 %v3238_v63 }
 0xc21   :  { %v4073_v31 = vpop.eup %4072 }
 0xc22   :  { %v3240_v57 = vmul.f32 %v4073_v31, %v3232_v50 }
 0xc24   :  { %v3248_v59 = vmul.f32 %v3554_v51, %v3240_v57 }
 0xc26   :  { %v3256_v54 = vadd.f32 %v3555_v52, %v3248_v59 }
 0xc28   :  { %v3258_v1 = vmul.f32 0.70710677, %v3256_v54  ;;  %v3257_v20 = vmul.f32 0.5, %v3256_v54 }
 0xc2a   :  { %v3261_v55 = vand.u32 2147483647, %v3258_v1  ;;  %vm3259_vm15 = vcmp.lt.f32.partialorder %v3258_v1, 0.0 }
 0xc2b   :  { %v3260_v27 = vsel %vm3259_vm15, -1.0, %v4236_v30 }
 0xc2c   :  { %v3262_v0 = vmul.f32 0.3275911, %v3261_v55  ;;  %v3275_v60 = vsub.f32 0.0, %v3261_v55 }
 0xc2e   :  { %v3263_v3 = vadd.f32 1.0, %v3262_v0  ;;  %v3276_v6 = vmul.f32 %v3275_v60, %v3261_v55 }
 0xc30   :  { %4074 = vrcp.f32 %v3263_v3  ;;  %v3277_v8 = vmul.f32 1.442695, %v3276_v6 }
 0xc32   :  { %4076 = vpow2.f32 %v3277_v8 }
 0xc3a   :  { %v4075_v5 = vpop.eup %4074 }
 0xc3b   :  { %v3266_v62 = vmul.f32 1.0614054, %v4075_v5 }
 0xc3c   :  { %v4077_v22 = vpop.eup %4076 }
 0xc3d   :  { %v3267_v7 = vadd.f32 -1.4531521, %v3266_v62 }
 0xc3f   :  { %v3268_v9 = vmul.f32 %v4075_v5, %v3267_v7 }
 0xc41   :  { %v3269_v10 = vadd.f32 1.4214138, %v3268_v9 }
 0xc43   :  { %v3270_v15 = vmul.f32 %v4075_v5, %v3269_v10 }
 0xc45   :  { %v3271_v16 = vadd.f32 -0.28449672, %v3270_v15 }
 0xc47   :  { %v3272_v18 = vmul.f32 %v4075_v5, %v3271_v16 }
 0xc49   :  { %v3273_v19 = vadd.f32 0.2548296, %v3272_v18 }
 0xc4b   :  { %v3274_v21 = vmul.f32 %v4075_v5, %v3273_v19 }
 0xc4d   :  { %v3279_v25 = vmul.f32 %v4077_v22, %v3274_v21 }
 0xc4f   :  { %v3280_v26 = vsub.f32 1.0, %v3279_v25 }
 0xc51   :  { %v3281_v28 = vmul.f32 %v3280_v26, %v3260_v27 }
 0xc53   :  { %v3282_v34 = vadd.f32 1.0, %v3281_v28 }
 0xc55   :  { %v3283_v56 = vmul.f32 %v3282_v34, %v3257_v20 }
 0xc57   :  { %v3291_v35 = vmul.f32 %v3556_v23, %v3283_v56 }
 0xc59   :  { %v3292_v58 = vsel %vm173_vm1, %v3291_v35, 0.0 }
 0xc5a   :  { %3293 = vadd.xlane.f32.xlu1 %v3292_v58 }
 0xce7   :  { %v3294_v12 = vpop.xlane.xlu1 %3293 }
 0xce8   :  { %v3302_v32 = vadd.f32 %v3557_v36, %v3294_v12 }
 0xcea   :  { %v3303_v37 = vsub.f32 0.0, %v3302_v32 }
 0xcec   :  { %v3304_v38 = vmul.f32 1.442695, %v3303_v37 }
 0xcee   :  { %4078 = vpow2.f32 %v3304_v38 }
 0xcf8   :  { %v4079_v11 = vpop.eup %4078 }
 0xcf9   :  { %v3306_v30 = vadd.f32 1.0, %v4079_v11 }
 0xcfb   :  { %4080 = vrcp.f32 %v3306_v30 }
 0xd05   :  { %v4081_v39 = vpop.eup %4080 }
 0xd06   :  { %3310 = vst.msk [vmem:[%s4722_s25] sm:$0x3] %vm3309_vm0, %v4081_v39 }
 0xd07   :  { %3315 = vsyncpa [#allocation4], 1 }
 0xd08   :  { %3316 = vsyncpa [#allocation6], 1 }
 0xd09   :  { %3317 = vsyncpa [#allocation9], 1 }
 0xd0a   :  { %3318 = vsyncpa [#allocation12], 1 }

</bundles_post_ra>
